<compile_context>
chip_gen: v5e
topology: v5e:2x2
jax: 0.10.0
libtpu: 0.0.40
codegen_flags: <defaults>
</compile_context>

<pallas_src>
import numpy as np
import jax
import jax.numpy as jnp
from jax import lax
from jax.experimental import pallas as pl
from jax.experimental.pallas import tpu as pltpu


# ---------------------------------------------------------------------------
# Pallas kernel: full decoder forward (linear -> multi-layer LSTM -> linear)
# ---------------------------------------------------------------------------
def decoder_kernel(latent_ref,   # [TB, L]
                   w_l2h_ref,    # [L, H]          latent_to_hidden.weight.T
                   b_l2h_ref,    # [1, H]
                   w_rec_ref,    # [(2D-1)*H, 4H]  fused per-layer weights
                   b_rec_ref,    # [D, 1, 4H]      b_ih + b_hh, gate-fused
                   w_h2o_ref,    # [H, O_pad]      hidden_to_output.weight.T (lane-padded)
                   b_h2o_ref,    # [1, O_pad]
                   out_ref,      # [T, TB, O_pad]
                   h_top_ref):   # VMEM scratch [T*TB, H]
    TB = latent_ref.shape[0]
    T = out_ref.shape[0]
    O_pad = out_ref.shape[2]
    H = w_l2h_ref.shape[1]
    D = b_rec_ref.shape[0]
    f32 = jnp.float32

    # latent -> hidden (nn.Linear): h_state = latent @ W^T + b
    h_state = (jnp.dot(latent_ref[...], w_l2h_ref[...],
                       preferred_element_type=f32) + b_l2h_ref[...])

    # Loop-invariant fused weights / bias rows, loaded once.
    #   layer 0      : rows [0, H)                          -> [H, 4H]
    #   layer l (>0) : rows [H + (l-1)*2H, H + l*2H)         -> [2H, 4H]
    #                  (first H rows = W_ih^T, next H = W_hh^T)
    w_layer = []
    b_layer = []
    for l in range(D):
        if l == 0:
            w_layer.append(w_rec_ref[0:H, :])
        else:
            r0 = H + (l - 1) * 2 * H
            w_layer.append(w_rec_ref[r0:r0 + 2 * H, :])
        b_layer.append(b_rec_ref[l])            # [1, 4H]; broadcasts in the add

    # h_0 = stack([h_state] * D), c_0 = zeros -- carried in registers.
    hs0 = tuple(h_state for _ in range(D))
    cs0 = tuple(jnp.zeros((TB, H), f32) for _ in range(D))

    def step(t, carry):
        hs, cs = carry
        new_h, new_c = [], []
        x = None
        for l in range(D):
            if l == 0:
                # x_t == 0 for layer 0: input term is exactly zero -> elided.
                lhs = hs[0]                                   # [TB, H]
            else:
                lhs = jnp.concatenate([x, hs[l]], axis=1)     # [TB, 2H]
            # ONE fused matmul per layer per step; output is lane-dense [TB,4H].
            z = (jnp.dot(lhs, w_layer[l], preferred_element_type=f32)
                 + b_layer[l])
            # Fused gate layout: [ i | f | o | g ]
            s = jax.nn.sigmoid(z[:, :3 * H])                  # one EUP slab
            g_g = jnp.tanh(z[:, 3 * H:])                      # one EUP slab
            i_g = s[:, :H]
            f_g = s[:, H:2 * H]
            o_g = s[:, 2 * H:3 * H]
            c = f_g * cs[l] + i_g * g_g
            h = o_g * jnp.tanh(c)
            new_h.append(h)
            new_c.append(c)
            x = h
        # Stash top-layer hidden state; output projection is hoisted out.
        row = pl.multiple_of(t * TB, TB)
        h_top_ref[pl.ds(row, TB), :] = x
        return (tuple(new_h), tuple(new_c))

    lax.fori_loop(0, T, step, (hs0, cs0), unroll=True)

    # hidden -> output: single matmul + single lane-dense full-tile store.
    out2d = (jnp.dot(h_top_ref[...], w_h2o_ref[...],
                     preferred_element_type=f32) + b_h2o_ref[...])
    out_ref[...] = out2d.reshape(T, TB, O_pad)


# ---------------------------------------------------------------------------
# Wrapper
# ---------------------------------------------------------------------------
def decoder_forward(latent, params, *, seq_len, depth, hidden, out_size,
                    batch_block=None):
    B, L = latent.shape
    T, D, H, O = seq_len, depth, hidden, out_size

    # Batch tile: default = whole batch padded to a sublane multiple (8),
    # capped at 256 rows so huge batches still grid (and shard on v7x megacore).
    if batch_block is None:
        TB = min(-(-B // 8) * 8, 256)
    else:
        TB = batch_block
    B_pad = -(-B // TB) * TB
    latent_p = latent if B_pad == B else jnp.pad(latent,
                                                 ((0, B_pad - B), (0, 0)))

    # Pad the output projection to a full 128-lane width -> lane-dense store.
    O_pad = -(-O // 128) * 128
    w_h2o_p = jnp.pad(params['w_h2o'], ((0, 0), (0, O_pad - O)))
    b_h2o_p = jnp.pad(params['b_h2o'], ((0, 0), (0, O_pad - O)))

    n_rec_rows = (2 * D - 1) * H

    def full_spec(shape):
        n = len(shape)
        return pl.BlockSpec(shape, lambda b, n=n: (0,) * n)

    # Advisory cost estimate (latency-bound serial recurrence; tiny bytes).
    flops = (2 * B_pad * L * H
             + 2 * T * D * B_pad * (2 * H) * (4 * H)
             + 2 * T * B_pad * H * O_pad)
    transcendentals = T * D * B_pad * 5 * H
    bytes_accessed = 4 * (latent_p.size + params['w_l2h'].size
                          + params['b_l2h'].size + params['w_rec'].size
                          + params['b'].size + w_h2o_p.size + b_h2o_p.size
                          + T * B_pad * O_pad)

    out = pl.pallas_call(
        decoder_kernel,
        out_shape=jax.ShapeDtypeStruct((T, B_pad, O_pad), jnp.float32),
        grid_spec=pltpu.PrefetchScalarGridSpec(
            num_scalar_prefetch=0,
            grid=(B_pad // TB,),
            in_specs=[
                pl.BlockSpec((TB, L), lambda b: (b, 0)),      # latent
                full_spec((L, H)),                            # w_l2h
                full_spec((1, H)),                            # b_l2h
                full_spec((n_rec_rows, 4 * H)),               # fused rec weights
                full_spec((D, 1, 4 * H)),                     # fused biases
                full_spec((H, O_pad)),                        # w_h2o (padded)
                full_spec((1, O_pad)),                        # b_h2o (padded)
            ],
            out_specs=pl.BlockSpec((T, TB, O_pad), lambda b: (0, b, 0)),
            scratch_shapes=[pltpu.VMEM((T * TB, H), jnp.float32)],
        ),
        compiler_params=pltpu.CompilerParams(
            dimension_semantics=("parallel",),
            vmem_limit_bytes=32 * 1024 * 1024),
        cost_estimate=pl.CostEstimate(flops=flops,
                                      transcendentals=transcendentals,
                                      bytes_accessed=bytes_accessed),
    )(latent_p, params['w_l2h'], params['b_l2h'], params['w_rec'],
      params['b'], w_h2o_p, b_h2o_p)

    return out[:, :B, :O]


# ---------------------------------------------------------------------------
# Deterministic parameter construction (PyTorch layout, synthetic init)
# ---------------------------------------------------------------------------
def make_params(key, *, L, H, D, O):
    ks = jax.random.split(key, 8)

    def xavier_uniform(k, fan_out, fan_in):
        a = float(np.sqrt(6.0 / (fan_in + fan_out)))
        return jax.random.uniform(k, (fan_out, fan_in), jnp.float32, -a, a)

    stdv = 1.0 / float(np.sqrt(H))   # PyTorch LSTM default init range

    w_l2h = xavier_uniform(ks[0], H, L)                                # [H, L]
    b_l2h = jax.random.uniform(ks[1], (H,), jnp.float32, -stdv, stdv)

    w_ih, w_hh, b_ih, b_hh = [], [], [], []
    for l in range(D):
        in_sz = 1 if l == 0 else H
        w_ih.append(jax.random.uniform(jax.random.fold_in(ks[2], l),
                                       (4 * H, in_sz), jnp.float32,
                                       -stdv, stdv))
        w_hh.append(jax.random.uniform(jax.random.fold_in(ks[3], l),
                                       (4 * H, H), jnp.float32, -stdv, stdv))
        b_ih.append(jax.random.uniform(jax.random.fold_in(ks[4], l),
                                       (4 * H,), jnp.float32, -stdv, stdv))
        b_hh.append(jax.random.uniform(jax.random.fold_in(ks[5], l),
                                       (4 * H,), jnp.float32, -stdv, stdv))

    w_h2o = xavier_uniform(ks[6], O, H)                                # [O, H]
    b_h2o = jax.random.uniform(ks[7], (O,), jnp.float32, -stdv, stdv)

    return dict(w_l2h=w_l2h, b_l2h=b_l2h, w_ih=w_ih, w_hh=w_hh,
                b_ih=b_ih, b_hh=b_hh, w_h2o=w_h2o, b_h2o=b_h2o)


def pack_params(p, *, D, H):
    """Repack PyTorch-layout params into the kernel's fused-gate layout.

    Gate column order in all fused tensors is [ i | f | o | g ] (PyTorch row
    order is i, f, g, o) so the three sigmoid gates are lane-contiguous.
    """
    def fuse_gate_cols(w):      # w: [4H, in] -> [in, 4H] columns [i|f|o|g]
        blocks = [w[0:H], w[H:2 * H], w[3 * H:4 * H], w[2 * H:3 * H]]
        return jnp.concatenate([blk.T for blk in blocks], axis=1)

    def fuse_gate_bias(b):      # [4H] -> [4H] reordered [i|f|o|g]
        return jnp.concatenate([b[0:H], b[H:2 * H], b[3 * H:4 * H],
                                b[2 * H:3 * H]])

    # Row layout of the single fused recurrent weight array:
    #   layer 0 : W_hh^T only (its input is the all-zero sequence -> elided)
    #   layer l : [ W_ih^T ; W_hh^T ]  stacked along the contraction dim (2H)
    rows = [fuse_gate_cols(p['w_hh'][0])]
    for l in range(1, D):
        rows.append(fuse_gate_cols(p['w_ih'][l]))
        rows.append(fuse_gate_cols(p['w_hh'][l]))
    w_rec = jnp.concatenate(rows, axis=0)                 # [(2D-1)*H, 4H]

    b = jnp.stack([fuse_gate_bias(p['b_ih'][l] + p['b_hh'][l])[None, :]
                   for l in range(D)])                    # [D, 1, 4H]

    return dict(w_l2h=p['w_l2h'].T,            # [L, H]
                b_l2h=p['b_l2h'][None, :],     # [1, H]
                w_rec=w_rec, b=b,
                w_h2o=p['w_h2o'].T,            # [H, O]
                b_h2o=p['b_h2o'][None, :])     # [1, O]


# ---------------------------------------------------------------------------
# Pure-JAX reference (PyTorch-style math) for a correctness check
# ---------------------------------------------------------------------------
def decoder_ref(latent, p, T, D, H, O):
    B = latent.shape[0]
    h_state = latent @ p['w_l2h'].T + p['b_l2h']
    h = [h_state for _ in range(D)]
    c = [jnp.zeros((B, H), jnp.float32) for _ in range(D)]
    outs = []
    for _ in range(T):
        x = jnp.zeros((B, 1), jnp.float32)          # decoder_inputs are zeros
        for l in range(D):
            gates = (x @ p['w_ih'][l].T + h[l] @ p['w_hh'][l].T
                     + p['b_ih'][l] + p['b_hh'][l])
            i = jax.nn.sigmoid(gates[:, :H])
            f = jax.nn.sigmoid(gates[:, H:2 * H])
            g = jnp.tanh(gates[:, 2 * H:3 * H])
            o = jax.nn.sigmoid(gates[:, 3 * H:])
            c[l] = f * c[l] + i * g
            h[l] = o * jnp.tanh(c[l])
            x = h[l]
        outs.append(x @ p['w_h2o'].T + p['b_h2o'])
    return jnp.stack(outs)


if __name__ == "__main__":
    # sequence_length=8, batch_size=2, hidden_size=32,
    # hidden_layer_depth=2, latent_length=16, output_size=2
    T, B, H, D, L, O = 8, 2, 32, 2, 16, 2

    key = jax.random.PRNGKey(0)
    k_lat, k_par = jax.random.split(key)
    latent = jax.random.normal(k_lat, (B, L), jnp.float32)

    canon = make_params(k_par, L=L, H=H, D=D, O=O)
    packed = pack_params(canon, D=D, H=H)

    out = decoder_forward(latent, packed, seq_len=T, depth=D, hidden=H,
                          out_size=O)
    out = jax.block_until_ready(out)
    assert out.shape == (T, B, O), out.shape

    ref = jax.block_until_ready(decoder_ref(latent, canon, T, D, H, O))
    if not np.allclose(np.asarray(out), np.asarray(ref), atol=1e-4, rtol=1e-4):
        raise AssertionError("Pallas kernel does not match JAX reference")

    print("KERNEL_OK")
</pallas_src>

<mosaic_0001>
module attributes {stable_mosaic.version = 11 : i64} {
  func.func @decoder_kernel(%arg0: i32, %arg1: memref<8x16xf32, #tpu.memory_space<vmem>>, %arg2: memref<16x32xf32, #tpu.memory_space<vmem>>, %arg3: memref<1x32xf32, #tpu.memory_space<vmem>>, %arg4: memref<96x128xf32, #tpu.memory_space<vmem>>, %arg5: memref<2x1x128xf32, #tpu.memory_space<vmem>>, %arg6: memref<32x128xf32, #tpu.memory_space<vmem>>, %arg7: memref<1x128xf32, #tpu.memory_space<vmem>>, %arg8: memref<8x8x128xf32, #tpu.memory_space<vmem>>, %arg9: memref<64x32xf32, #tpu.memory_space<vmem>>) attributes {dimension_semantics = [#tpu.dimension_semantics<parallel>], iteration_bounds = array<i64: 1>, scalar_prefetch = 0 : i64, scratch_operands = 1 : i64, tpu.core_type = #tpu.core_type<tc>, window_params = [{transform_indices = @transform_0, window_bounds = array<i64: 8, 16>}, {pipeline_mode = #tpu.pipeline_mode<synchronous>, transform_indices = @transform_1, window_bounds = array<i64: 16, 32>}, {pipeline_mode = #tpu.pipeline_mode<synchronous>, transform_indices = @transform_2, window_bounds = array<i64: 1, 32>}, {pipeline_mode = #tpu.pipeline_mode<synchronous>, transform_indices = @transform_3, window_bounds = array<i64: 96, 128>}, {pipeline_mode = #tpu.pipeline_mode<synchronous>, transform_indices = @transform_4, window_bounds = array<i64: 2, 1, 128>}, {pipeline_mode = #tpu.pipeline_mode<synchronous>, transform_indices = @transform_5, window_bounds = array<i64: 32, 128>}, {pipeline_mode = #tpu.pipeline_mode<synchronous>, transform_indices = @transform_6, window_bounds = array<i64: 1, 128>}, {transform_indices = @transform_7, window_bounds = array<i64: 8, 8, 128>}]} {
    %c0 = arith.constant 0 : index
    %c0_0 = arith.constant 0 : index
    %0 = vector.load %arg1[%c0, %c0_0] : memref<8x16xf32, #tpu.memory_space<vmem>>, vector<8x16xf32>
    %c0_1 = arith.constant 0 : index
    %c0_2 = arith.constant 0 : index
    %1 = vector.load %arg2[%c0_1, %c0_2] : memref<16x32xf32, #tpu.memory_space<vmem>>, vector<16x32xf32>
    %cst = arith.constant dense<0.000000e+00> : vector<8x32xf32>
    %2 = tpu.matmul %0, %1, %cst {dimension_numbers = #tpu.dot_dimension_numbers<[1], [0], [0], [1], [0, 0, 1, 1], [], []>} : vector<8x16xf32>, vector<16x32xf32>, vector<8x32xf32> -> vector<8x32xf32>
    %c0_3 = arith.constant 0 : index
    %c0_4 = arith.constant 0 : index
    %3 = vector.load %arg3[%c0_3, %c0_4] : memref<1x32xf32, #tpu.memory_space<vmem>>, vector<1x32xf32>
    %4 = vector.broadcast %3 : vector<1x32xf32> to vector<8x32xf32>
    %5 = arith.addf %2, %4 : vector<8x32xf32>
    %c0_5 = arith.constant 0 : index
    %c0_6 = arith.constant 0 : index
    %6 = vector.load %arg4[%c0_5, %c0_6] : memref<96x128xf32, #tpu.memory_space<vmem>>, vector<32x128xf32>
    %c0_7 = arith.constant 0 : index
    %c0_8 = arith.constant 0 : index
    %c0_9 = arith.constant 0 : index
    %7 = vector.load %arg5[%c0_7, %c0_8, %c0_9] : memref<2x1x128xf32, #tpu.memory_space<vmem>>, vector<1x1x128xf32>
    %8 = vector.shape_cast %7 : vector<1x1x128xf32> to vector<1x128xf32>
    %c32 = arith.constant 32 : index
    %c0_10 = arith.constant 0 : index
    %9 = vector.load %arg4[%c32, %c0_10] : memref<96x128xf32, #tpu.memory_space<vmem>>, vector<64x128xf32>
    %c1 = arith.constant 1 : index
    %c0_11 = arith.constant 0 : index
    %c0_12 = arith.constant 0 : index
    %10 = vector.load %arg5[%c1, %c0_11, %c0_12] : memref<2x1x128xf32, #tpu.memory_space<vmem>>, vector<1x1x128xf32>
    %11 = vector.shape_cast %10 : vector<1x1x128xf32> to vector<1x128xf32>
    %cst_13 = arith.constant 0.000000e+00 : f32
    %12 = vector.broadcast %cst_13 : f32 to vector<8x32xf32>
    %cst_14 = arith.constant 0.000000e+00 : f32
    %13 = vector.broadcast %cst_14 : f32 to vector<8x32xf32>
    %c0_i32 = arith.constant 0 : i32
    %cst_15 = arith.constant dense<0.000000e+00> : vector<8x128xf32>
    %14 = tpu.matmul %5, %6, %cst_15 {dimension_numbers = #tpu.dot_dimension_numbers<[1], [0], [0], [1], [0, 0, 1, 1], [], []>} : vector<8x32xf32>, vector<32x128xf32>, vector<8x128xf32> -> vector<8x128xf32>
    %15 = vector.broadcast %8 : vector<1x128xf32> to vector<8x128xf32>
    %16 = arith.addf %14, %15 : vector<8x128xf32>
    %17 = vector.extract_strided_slice %16 {offsets = [0, 0], sizes = [8, 96], strides = [1, 1]} : vector<8x128xf32> to vector<8x96xf32>
    %18 = arith.negf %17 : vector<8x96xf32>
    %19 = math.exp %18 : vector<8x96xf32>
    %cst_16 = arith.constant 1.000000e+00 : f32
    %20 = vector.broadcast %cst_16 : f32 to vector<8x96xf32>
    %21 = arith.addf %20, %19 : vector<8x96xf32>
    %22 = arith.divf %20, %21 : vector<8x96xf32>
    %23 = vector.extract_strided_slice %16 {offsets = [0, 96], sizes = [8, 32], strides = [1, 1]} : vector<8x128xf32> to vector<8x32xf32>
    %24 = math.tanh %23 : vector<8x32xf32>
    %25 = vector.extract_strided_slice %22 {offsets = [0, 0], sizes = [8, 32], strides = [1, 1]} : vector<8x96xf32> to vector<8x32xf32>
    %26 = vector.extract_strided_slice %22 {offsets = [0, 32], sizes = [8, 32], strides = [1, 1]} : vector<8x96xf32> to vector<8x32xf32>
    %27 = vector.extract_strided_slice %22 {offsets = [0, 64], sizes = [8, 32], strides = [1, 1]} : vector<8x96xf32> to vector<8x32xf32>
    %28 = arith.mulf %26, %12 : vector<8x32xf32>
    %29 = arith.mulf %25, %24 : vector<8x32xf32>
    %30 = arith.addf %28, %29 : vector<8x32xf32>
    %31 = math.tanh %30 : vector<8x32xf32>
    %32 = arith.mulf %27, %31 : vector<8x32xf32>
    %33 = tpu.concatenate %32, %5 in 1 : vector<8x32xf32>, vector<8x32xf32> -> vector<8x64xf32>
    %cst_17 = arith.constant dense<0.000000e+00> : vector<8x128xf32>
    %34 = tpu.matmul %33, %9, %cst_17 {dimension_numbers = #tpu.dot_dimension_numbers<[1], [0], [0], [1], [0, 0, 1, 1], [], []>} : vector<8x64xf32>, vector<64x128xf32>, vector<8x128xf32> -> vector<8x128xf32>
    %35 = vector.broadcast %11 : vector<1x128xf32> to vector<8x128xf32>
    %36 = arith.addf %34, %35 : vector<8x128xf32>
    %37 = vector.extract_strided_slice %36 {offsets = [0, 0], sizes = [8, 96], strides = [1, 1]} : vector<8x128xf32> to vector<8x96xf32>
    %38 = arith.negf %37 : vector<8x96xf32>
    %39 = math.exp %38 : vector<8x96xf32>
    %cst_18 = arith.constant 1.000000e+00 : f32
    %40 = vector.broadcast %cst_18 : f32 to vector<8x96xf32>
    %41 = arith.addf %40, %39 : vector<8x96xf32>
    %42 = arith.divf %40, %41 : vector<8x96xf32>
    %43 = vector.extract_strided_slice %36 {offsets = [0, 96], sizes = [8, 32], strides = [1, 1]} : vector<8x128xf32> to vector<8x32xf32>
    %44 = math.tanh %43 : vector<8x32xf32>
    %45 = vector.extract_strided_slice %42 {offsets = [0, 0], sizes = [8, 32], strides = [1, 1]} : vector<8x96xf32> to vector<8x32xf32>
    %46 = vector.extract_strided_slice %42 {offsets = [0, 32], sizes = [8, 32], strides = [1, 1]} : vector<8x96xf32> to vector<8x32xf32>
    %47 = vector.extract_strided_slice %42 {offsets = [0, 64], sizes = [8, 32], strides = [1, 1]} : vector<8x96xf32> to vector<8x32xf32>
    %48 = arith.mulf %46, %13 : vector<8x32xf32>
    %49 = arith.mulf %45, %44 : vector<8x32xf32>
    %50 = arith.addf %48, %49 : vector<8x32xf32>
    %51 = math.tanh %50 : vector<8x32xf32>
    %52 = arith.mulf %47, %51 : vector<8x32xf32>
    %c8_i32 = arith.constant 8 : i32
    %53 = arith.muli %c0_i32, %c8_i32 : i32
    %54 = tpu.assume_multiple %53, 8 : i32
    %55 = arith.index_cast %54 : i32 to index
    %c0_19 = arith.constant 0 : index
    %56 = vector.load %arg9[%55, %c0_19] : memref<64x32xf32, #tpu.memory_space<vmem>>, vector<8x32xf32>
    tpu.vector_store %arg9[%55, %c0_19], %52 {strides = array<i32>} : memref<64x32xf32, #tpu.memory_space<vmem>>, vector<8x32xf32>,
    %c1_i32 = arith.constant 1 : i32
    %cst_20 = arith.constant dense<0.000000e+00> : vector<8x128xf32>
    %57 = tpu.matmul %32, %6, %cst_20 {dimension_numbers = #tpu.dot_dimension_numbers<[1], [0], [0], [1], [0, 0, 1, 1], [], []>} : vector<8x32xf32>, vector<32x128xf32>, vector<8x128xf32> -> vector<8x128xf32>
    %58 = vector.broadcast %8 : vector<1x128xf32> to vector<8x128xf32>
    %59 = arith.addf %57, %58 : vector<8x128xf32>
    %60 = vector.extract_strided_slice %59 {offsets = [0, 0], sizes = [8, 96], strides = [1, 1]} : vector<8x128xf32> to vector<8x96xf32>
    %61 = arith.negf %60 : vector<8x96xf32>
    %62 = math.exp %61 : vector<8x96xf32>
    %cst_21 = arith.constant 1.000000e+00 : f32
    %63 = vector.broadcast %cst_21 : f32 to vector<8x96xf32>
    %64 = arith.addf %63, %62 : vector<8x96xf32>
    %65 = arith.divf %63, %64 : vector<8x96xf32>
    %66 = vector.extract_strided_slice %59 {offsets = [0, 96], sizes = [8, 32], strides = [1, 1]} : vector<8x128xf32> to vector<8x32xf32>
    %67 = math.tanh %66 : vector<8x32xf32>
    %68 = vector.extract_strided_slice %65 {offsets = [0, 0], sizes = [8, 32], strides = [1, 1]} : vector<8x96xf32> to vector<8x32xf32>
    %69 = vector.extract_strided_slice %65 {offsets = [0, 32], sizes = [8, 32], strides = [1, 1]} : vector<8x96xf32> to vector<8x32xf32>
    %70 = vector.extract_strided_slice %65 {offsets = [0, 64], sizes = [8, 32], strides = [1, 1]} : vector<8x96xf32> to vector<8x32xf32>
    %71 = arith.mulf %69, %30 : vector<8x32xf32>
    %72 = arith.mulf %68, %67 : vector<8x32xf32>
    %73 = arith.addf %71, %72 : vector<8x32xf32>
    %74 = math.tanh %73 : vector<8x32xf32>
    %75 = arith.mulf %70, %74 : vector<8x32xf32>
    %76 = tpu.concatenate %75, %52 in 1 : vector<8x32xf32>, vector<8x32xf32> -> vector<8x64xf32>
    %cst_22 = arith.constant dense<0.000000e+00> : vector<8x128xf32>
    %77 = tpu.matmul %76, %9, %cst_22 {dimension_numbers = #tpu.dot_dimension_numbers<[1], [0], [0], [1], [0, 0, 1, 1], [], []>} : vector<8x64xf32>, vector<64x128xf32>, vector<8x128xf32> -> vector<8x128xf32>
    %78 = vector.broadcast %11 : vector<1x128xf32> to vector<8x128xf32>
    %79 = arith.addf %77, %78 : vector<8x128xf32>
    %80 = vector.extract_strided_slice %79 {offsets = [0, 0], sizes = [8, 96], strides = [1, 1]} : vector<8x128xf32> to vector<8x96xf32>
    %81 = arith.negf %80 : vector<8x96xf32>
    %82 = math.exp %81 : vector<8x96xf32>
    %cst_23 = arith.constant 1.000000e+00 : f32
    %83 = vector.broadcast %cst_23 : f32 to vector<8x96xf32>
    %84 = arith.addf %83, %82 : vector<8x96xf32>
    %85 = arith.divf %83, %84 : vector<8x96xf32>
    %86 = vector.extract_strided_slice %79 {offsets = [0, 96], sizes = [8, 32], strides = [1, 1]} : vector<8x128xf32> to vector<8x32xf32>
    %87 = math.tanh %86 : vector<8x32xf32>
    %88 = vector.extract_strided_slice %85 {offsets = [0, 0], sizes = [8, 32], strides = [1, 1]} : vector<8x96xf32> to vector<8x32xf32>
    %89 = vector.extract_strided_slice %85 {offsets = [0, 32], sizes = [8, 32], strides = [1, 1]} : vector<8x96xf32> to vector<8x32xf32>
    %90 = vector.extract_strided_slice %85 {offsets = [0, 64], sizes = [8, 32], strides = [1, 1]} : vector<8x96xf32> to vector<8x32xf32>
    %91 = arith.mulf %89, %50 : vector<8x32xf32>
    %92 = arith.mulf %88, %87 : vector<8x32xf32>
    %93 = arith.addf %91, %92 : vector<8x32xf32>
    %94 = math.tanh %93 : vector<8x32xf32>
    %95 = arith.mulf %90, %94 : vector<8x32xf32>
    %c8_i32_24 = arith.constant 8 : i32
    %96 = arith.muli %c1_i32, %c8_i32_24 : i32
    %97 = tpu.assume_multiple %96, 8 : i32
    %98 = arith.index_cast %97 : i32 to index
    %c0_25 = arith.constant 0 : index
    %99 = vector.load %arg9[%98, %c0_25] : memref<64x32xf32, #tpu.memory_space<vmem>>, vector<8x32xf32>
    tpu.vector_store %arg9[%98, %c0_25], %95 {strides = array<i32>} : memref<64x32xf32, #tpu.memory_space<vmem>>, vector<8x32xf32>,
    %c2_i32 = arith.constant 2 : i32
    %cst_26 = arith.constant dense<0.000000e+00> : vector<8x128xf32>
    %100 = tpu.matmul %75, %6, %cst_26 {dimension_numbers = #tpu.dot_dimension_numbers<[1], [0], [0], [1], [0, 0, 1, 1], [], []>} : vector<8x32xf32>, vector<32x128xf32>, vector<8x128xf32> -> vector<8x128xf32>
    %101 = vector.broadcast %8 : vector<1x128xf32> to vector<8x128xf32>
    %102 = arith.addf %100, %101 : vector<8x128xf32>
    %103 = vector.extract_strided_slice %102 {offsets = [0, 0], sizes = [8, 96], strides = [1, 1]} : vector<8x128xf32> to vector<8x96xf32>
    %104 = arith.negf %103 : vector<8x96xf32>
    %105 = math.exp %104 : vector<8x96xf32>
    %cst_27 = arith.constant 1.000000e+00 : f32
    %106 = vector.broadcast %cst_27 : f32 to vector<8x96xf32>
    %107 = arith.addf %106, %105 : vector<8x96xf32>
    %108 = arith.divf %106, %107 : vector<8x96xf32>
    %109 = vector.extract_strided_slice %102 {offsets = [0, 96], sizes = [8, 32], strides = [1, 1]} : vector<8x128xf32> to vector<8x32xf32>
    %110 = math.tanh %109 : vector<8x32xf32>
    %111 = vector.extract_strided_slice %108 {offsets = [0, 0], sizes = [8, 32], strides = [1, 1]} : vector<8x96xf32> to vector<8x32xf32>
    %112 = vector.extract_strided_slice %108 {offsets = [0, 32], sizes = [8, 32], strides = [1, 1]} : vector<8x96xf32> to vector<8x32xf32>
    %113 = vector.extract_strided_slice %108 {offsets = [0, 64], sizes = [8, 32], strides = [1, 1]} : vector<8x96xf32> to vector<8x32xf32>
    %114 = arith.mulf %112, %73 : vector<8x32xf32>
    %115 = arith.mulf %111, %110 : vector<8x32xf32>
    %116 = arith.addf %114, %115 : vector<8x32xf32>
    %117 = math.tanh %116 : vector<8x32xf32>
    %118 = arith.mulf %113, %117 : vector<8x32xf32>
    %119 = tpu.concatenate %118, %95 in 1 : vector<8x32xf32>, vector<8x32xf32> -> vector<8x64xf32>
    %cst_28 = arith.constant dense<0.000000e+00> : vector<8x128xf32>
    %120 = tpu.matmul %119, %9, %cst_28 {dimension_numbers = #tpu.dot_dimension_numbers<[1], [0], [0], [1], [0, 0, 1, 1], [], []>} : vector<8x64xf32>, vector<64x128xf32>, vector<8x128xf32> -> vector<8x128xf32>
    %121 = vector.broadcast %11 : vector<1x128xf32> to vector<8x128xf32>
    %122 = arith.addf %120, %121 : vector<8x128xf32>
    %123 = vector.extract_strided_slice %122 {offsets = [0, 0], sizes = [8, 96], strides = [1, 1]} : vector<8x128xf32> to vector<8x96xf32>
    %124 = arith.negf %123 : vector<8x96xf32>
    %125 = math.exp %124 : vector<8x96xf32>
    %cst_29 = arith.constant 1.000000e+00 : f32
    %126 = vector.broadcast %cst_29 : f32 to vector<8x96xf32>
    %127 = arith.addf %126, %125 : vector<8x96xf32>
    %128 = arith.divf %126, %127 : vector<8x96xf32>
    %129 = vector.extract_strided_slice %122 {offsets = [0, 96], sizes = [8, 32], strides = [1, 1]} : vector<8x128xf32> to vector<8x32xf32>
    %130 = math.tanh %129 : vector<8x32xf32>
    %131 = vector.extract_strided_slice %128 {offsets = [0, 0], sizes = [8, 32], strides = [1, 1]} : vector<8x96xf32> to vector<8x32xf32>
    %132 = vector.extract_strided_slice %128 {offsets = [0, 32], sizes = [8, 32], strides = [1, 1]} : vector<8x96xf32> to vector<8x32xf32>
    %133 = vector.extract_strided_slice %128 {offsets = [0, 64], sizes = [8, 32], strides = [1, 1]} : vector<8x96xf32> to vector<8x32xf32>
    %134 = arith.mulf %132, %93 : vector<8x32xf32>
    %135 = arith.mulf %131, %130 : vector<8x32xf32>
    %136 = arith.addf %134, %135 : vector<8x32xf32>
    %137 = math.tanh %136 : vector<8x32xf32>
    %138 = arith.mulf %133, %137 : vector<8x32xf32>
    %c8_i32_30 = arith.constant 8 : i32
    %139 = arith.muli %c2_i32, %c8_i32_30 : i32
    %140 = tpu.assume_multiple %139, 8 : i32
    %141 = arith.index_cast %140 : i32 to index
    %c0_31 = arith.constant 0 : index
    %142 = vector.load %arg9[%141, %c0_31] : memref<64x32xf32, #tpu.memory_space<vmem>>, vector<8x32xf32>
    tpu.vector_store %arg9[%141, %c0_31], %138 {strides = array<i32>} : memref<64x32xf32, #tpu.memory_space<vmem>>, vector<8x32xf32>,
    %c3_i32 = arith.constant 3 : i32
    %cst_32 = arith.constant dense<0.000000e+00> : vector<8x128xf32>
    %143 = tpu.matmul %118, %6, %cst_32 {dimension_numbers = #tpu.dot_dimension_numbers<[1], [0], [0], [1], [0, 0, 1, 1], [], []>} : vector<8x32xf32>, vector<32x128xf32>, vector<8x128xf32> -> vector<8x128xf32>
    %144 = vector.broadcast %8 : vector<1x128xf32> to vector<8x128xf32>
    %145 = arith.addf %143, %144 : vector<8x128xf32>
    %146 = vector.extract_strided_slice %145 {offsets = [0, 0], sizes = [8, 96], strides = [1, 1]} : vector<8x128xf32> to vector<8x96xf32>
    %147 = arith.negf %146 : vector<8x96xf32>
    %148 = math.exp %147 : vector<8x96xf32>
    %cst_33 = arith.constant 1.000000e+00 : f32
    %149 = vector.broadcast %cst_33 : f32 to vector<8x96xf32>
    %150 = arith.addf %149, %148 : vector<8x96xf32>
    %151 = arith.divf %149, %150 : vector<8x96xf32>
    %152 = vector.extract_strided_slice %145 {offsets = [0, 96], sizes = [8, 32], strides = [1, 1]} : vector<8x128xf32> to vector<8x32xf32>
    %153 = math.tanh %152 : vector<8x32xf32>
    %154 = vector.extract_strided_slice %151 {offsets = [0, 0], sizes = [8, 32], strides = [1, 1]} : vector<8x96xf32> to vector<8x32xf32>
    %155 = vector.extract_strided_slice %151 {offsets = [0, 32], sizes = [8, 32], strides = [1, 1]} : vector<8x96xf32> to vector<8x32xf32>
    %156 = vector.extract_strided_slice %151 {offsets = [0, 64], sizes = [8, 32], strides = [1, 1]} : vector<8x96xf32> to vector<8x32xf32>
    %157 = arith.mulf %155, %116 : vector<8x32xf32>
    %158 = arith.mulf %154, %153 : vector<8x32xf32>
    %159 = arith.addf %157, %158 : vector<8x32xf32>
    %160 = math.tanh %159 : vector<8x32xf32>
    %161 = arith.mulf %156, %160 : vector<8x32xf32>
    %162 = tpu.concatenate %161, %138 in 1 : vector<8x32xf32>, vector<8x32xf32> -> vector<8x64xf32>
    %cst_34 = arith.constant dense<0.000000e+00> : vector<8x128xf32>
    %163 = tpu.matmul %162, %9, %cst_34 {dimension_numbers = #tpu.dot_dimension_numbers<[1], [0], [0], [1], [0, 0, 1, 1], [], []>} : vector<8x64xf32>, vector<64x128xf32>, vector<8x128xf32> -> vector<8x128xf32>
    %164 = vector.broadcast %11 : vector<1x128xf32> to vector<8x128xf32>
    %165 = arith.addf %163, %164 : vector<8x128xf32>
    %166 = vector.extract_strided_slice %165 {offsets = [0, 0], sizes = [8, 96], strides = [1, 1]} : vector<8x128xf32> to vector<8x96xf32>
    %167 = arith.negf %166 : vector<8x96xf32>
    %168 = math.exp %167 : vector<8x96xf32>
    %cst_35 = arith.constant 1.000000e+00 : f32
    %169 = vector.broadcast %cst_35 : f32 to vector<8x96xf32>
    %170 = arith.addf %169, %168 : vector<8x96xf32>
    %171 = arith.divf %169, %170 : vector<8x96xf32>
    %172 = vector.extract_strided_slice %165 {offsets = [0, 96], sizes = [8, 32], strides = [1, 1]} : vector<8x128xf32> to vector<8x32xf32>
    %173 = math.tanh %172 : vector<8x32xf32>
    %174 = vector.extract_strided_slice %171 {offsets = [0, 0], sizes = [8, 32], strides = [1, 1]} : vector<8x96xf32> to vector<8x32xf32>
    %175 = vector.extract_strided_slice %171 {offsets = [0, 32], sizes = [8, 32], strides = [1, 1]} : vector<8x96xf32> to vector<8x32xf32>
    %176 = vector.extract_strided_slice %171 {offsets = [0, 64], sizes = [8, 32], strides = [1, 1]} : vector<8x96xf32> to vector<8x32xf32>
    %177 = arith.mulf %175, %136 : vector<8x32xf32>
    %178 = arith.mulf %174, %173 : vector<8x32xf32>
    %179 = arith.addf %177, %178 : vector<8x32xf32>
    %180 = math.tanh %179 : vector<8x32xf32>
    %181 = arith.mulf %176, %180 : vector<8x32xf32>
    %c8_i32_36 = arith.constant 8 : i32
    %182 = arith.muli %c3_i32, %c8_i32_36 : i32
    %183 = tpu.assume_multiple %182, 8 : i32
    %184 = arith.index_cast %183 : i32 to index
    %c0_37 = arith.constant 0 : index
    %185 = vector.load %arg9[%184, %c0_37] : memref<64x32xf32, #tpu.memory_space<vmem>>, vector<8x32xf32>
    tpu.vector_store %arg9[%184, %c0_37], %181 {strides = array<i32>} : memref<64x32xf32, #tpu.memory_space<vmem>>, vector<8x32xf32>,
    %c4_i32 = arith.constant 4 : i32
    %cst_38 = arith.constant dense<0.000000e+00> : vector<8x128xf32>
    %186 = tpu.matmul %161, %6, %cst_38 {dimension_numbers = #tpu.dot_dimension_numbers<[1], [0], [0], [1], [0, 0, 1, 1], [], []>} : vector<8x32xf32>, vector<32x128xf32>, vector<8x128xf32> -> vector<8x128xf32>
    %187 = vector.broadcast %8 : vector<1x128xf32> to vector<8x128xf32>
    %188 = arith.addf %186, %187 : vector<8x128xf32>
    %189 = vector.extract_strided_slice %188 {offsets = [0, 0], sizes = [8, 96], strides = [1, 1]} : vector<8x128xf32> to vector<8x96xf32>
    %190 = arith.negf %189 : vector<8x96xf32>
    %191 = math.exp %190 : vector<8x96xf32>
    %cst_39 = arith.constant 1.000000e+00 : f32
    %192 = vector.broadcast %cst_39 : f32 to vector<8x96xf32>
    %193 = arith.addf %192, %191 : vector<8x96xf32>
    %194 = arith.divf %192, %193 : vector<8x96xf32>
    %195 = vector.extract_strided_slice %188 {offsets = [0, 96], sizes = [8, 32], strides = [1, 1]} : vector<8x128xf32> to vector<8x32xf32>
    %196 = math.tanh %195 : vector<8x32xf32>
    %197 = vector.extract_strided_slice %194 {offsets = [0, 0], sizes = [8, 32], strides = [1, 1]} : vector<8x96xf32> to vector<8x32xf32>
    %198 = vector.extract_strided_slice %194 {offsets = [0, 32], sizes = [8, 32], strides = [1, 1]} : vector<8x96xf32> to vector<8x32xf32>
    %199 = vector.extract_strided_slice %194 {offsets = [0, 64], sizes = [8, 32], strides = [1, 1]} : vector<8x96xf32> to vector<8x32xf32>
    %200 = arith.mulf %198, %159 : vector<8x32xf32>
    %201 = arith.mulf %197, %196 : vector<8x32xf32>
    %202 = arith.addf %200, %201 : vector<8x32xf32>
    %203 = math.tanh %202 : vector<8x32xf32>
    %204 = arith.mulf %199, %203 : vector<8x32xf32>
    %205 = tpu.concatenate %204, %181 in 1 : vector<8x32xf32>, vector<8x32xf32> -> vector<8x64xf32>
    %cst_40 = arith.constant dense<0.000000e+00> : vector<8x128xf32>
    %206 = tpu.matmul %205, %9, %cst_40 {dimension_numbers = #tpu.dot_dimension_numbers<[1], [0], [0], [1], [0, 0, 1, 1], [], []>} : vector<8x64xf32>, vector<64x128xf32>, vector<8x128xf32> -> vector<8x128xf32>
    %207 = vector.broadcast %11 : vector<1x128xf32> to vector<8x128xf32>
    %208 = arith.addf %206, %207 : vector<8x128xf32>
    %209 = vector.extract_strided_slice %208 {offsets = [0, 0], sizes = [8, 96], strides = [1, 1]} : vector<8x128xf32> to vector<8x96xf32>
    %210 = arith.negf %209 : vector<8x96xf32>
    %211 = math.exp %210 : vector<8x96xf32>
    %cst_41 = arith.constant 1.000000e+00 : f32
    %212 = vector.broadcast %cst_41 : f32 to vector<8x96xf32>
    %213 = arith.addf %212, %211 : vector<8x96xf32>
    %214 = arith.divf %212, %213 : vector<8x96xf32>
    %215 = vector.extract_strided_slice %208 {offsets = [0, 96], sizes = [8, 32], strides = [1, 1]} : vector<8x128xf32> to vector<8x32xf32>
    %216 = math.tanh %215 : vector<8x32xf32>
    %217 = vector.extract_strided_slice %214 {offsets = [0, 0], sizes = [8, 32], strides = [1, 1]} : vector<8x96xf32> to vector<8x32xf32>
    %218 = vector.extract_strided_slice %214 {offsets = [0, 32], sizes = [8, 32], strides = [1, 1]} : vector<8x96xf32> to vector<8x32xf32>
    %219 = vector.extract_strided_slice %214 {offsets = [0, 64], sizes = [8, 32], strides = [1, 1]} : vector<8x96xf32> to vector<8x32xf32>
    %220 = arith.mulf %218, %179 : vector<8x32xf32>
    %221 = arith.mulf %217, %216 : vector<8x32xf32>
    %222 = arith.addf %220, %221 : vector<8x32xf32>
    %223 = math.tanh %222 : vector<8x32xf32>
    %224 = arith.mulf %219, %223 : vector<8x32xf32>
    %c8_i32_42 = arith.constant 8 : i32
    %225 = arith.muli %c4_i32, %c8_i32_42 : i32
    %226 = tpu.assume_multiple %225, 8 : i32
    %227 = arith.index_cast %226 : i32 to index
    %c0_43 = arith.constant 0 : index
    %228 = vector.load %arg9[%227, %c0_43] : memref<64x32xf32, #tpu.memory_space<vmem>>, vector<8x32xf32>
    tpu.vector_store %arg9[%227, %c0_43], %224 {strides = array<i32>} : memref<64x32xf32, #tpu.memory_space<vmem>>, vector<8x32xf32>,
    %c5_i32 = arith.constant 5 : i32
    %cst_44 = arith.constant dense<0.000000e+00> : vector<8x128xf32>
    %229 = tpu.matmul %204, %6, %cst_44 {dimension_numbers = #tpu.dot_dimension_numbers<[1], [0], [0], [1], [0, 0, 1, 1], [], []>} : vector<8x32xf32>, vector<32x128xf32>, vector<8x128xf32> -> vector<8x128xf32>
    %230 = vector.broadcast %8 : vector<1x128xf32> to vector<8x128xf32>
    %231 = arith.addf %229, %230 : vector<8x128xf32>
    %232 = vector.extract_strided_slice %231 {offsets = [0, 0], sizes = [8, 96], strides = [1, 1]} : vector<8x128xf32> to vector<8x96xf32>
    %233 = arith.negf %232 : vector<8x96xf32>
    %234 = math.exp %233 : vector<8x96xf32>
    %cst_45 = arith.constant 1.000000e+00 : f32
    %235 = vector.broadcast %cst_45 : f32 to vector<8x96xf32>
    %236 = arith.addf %235, %234 : vector<8x96xf32>
    %237 = arith.divf %235, %236 : vector<8x96xf32>
    %238 = vector.extract_strided_slice %231 {offsets = [0, 96], sizes = [8, 32], strides = [1, 1]} : vector<8x128xf32> to vector<8x32xf32>
    %239 = math.tanh %238 : vector<8x32xf32>
    %240 = vector.extract_strided_slice %237 {offsets = [0, 0], sizes = [8, 32], strides = [1, 1]} : vector<8x96xf32> to vector<8x32xf32>
    %241 = vector.extract_strided_slice %237 {offsets = [0, 32], sizes = [8, 32], strides = [1, 1]} : vector<8x96xf32> to vector<8x32xf32>
    %242 = vector.extract_strided_slice %237 {offsets = [0, 64], sizes = [8, 32], strides = [1, 1]} : vector<8x96xf32> to vector<8x32xf32>
    %243 = arith.mulf %241, %202 : vector<8x32xf32>
    %244 = arith.mulf %240, %239 : vector<8x32xf32>
    %245 = arith.addf %243, %244 : vector<8x32xf32>
    %246 = math.tanh %245 : vector<8x32xf32>
    %247 = arith.mulf %242, %246 : vector<8x32xf32>
    %248 = tpu.concatenate %247, %224 in 1 : vector<8x32xf32>, vector<8x32xf32> -> vector<8x64xf32>
    %cst_46 = arith.constant dense<0.000000e+00> : vector<8x128xf32>
    %249 = tpu.matmul %248, %9, %cst_46 {dimension_numbers = #tpu.dot_dimension_numbers<[1], [0], [0], [1], [0, 0, 1, 1], [], []>} : vector<8x64xf32>, vector<64x128xf32>, vector<8x128xf32> -> vector<8x128xf32>
    %250 = vector.broadcast %11 : vector<1x128xf32> to vector<8x128xf32>
    %251 = arith.addf %249, %250 : vector<8x128xf32>
    %252 = vector.extract_strided_slice %251 {offsets = [0, 0], sizes = [8, 96], strides = [1, 1]} : vector<8x128xf32> to vector<8x96xf32>
    %253 = arith.negf %252 : vector<8x96xf32>
    %254 = math.exp %253 : vector<8x96xf32>
    %cst_47 = arith.constant 1.000000e+00 : f32
    %255 = vector.broadcast %cst_47 : f32 to vector<8x96xf32>
    %256 = arith.addf %255, %254 : vector<8x96xf32>
    %257 = arith.divf %255, %256 : vector<8x96xf32>
    %258 = vector.extract_strided_slice %251 {offsets = [0, 96], sizes = [8, 32], strides = [1, 1]} : vector<8x128xf32> to vector<8x32xf32>
    %259 = math.tanh %258 : vector<8x32xf32>
    %260 = vector.extract_strided_slice %257 {offsets = [0, 0], sizes = [8, 32], strides = [1, 1]} : vector<8x96xf32> to vector<8x32xf32>
    %261 = vector.extract_strided_slice %257 {offsets = [0, 32], sizes = [8, 32], strides = [1, 1]} : vector<8x96xf32> to vector<8x32xf32>
    %262 = vector.extract_strided_slice %257 {offsets = [0, 64], sizes = [8, 32], strides = [1, 1]} : vector<8x96xf32> to vector<8x32xf32>
    %263 = arith.mulf %261, %222 : vector<8x32xf32>
    %264 = arith.mulf %260, %259 : vector<8x32xf32>
    %265 = arith.addf %263, %264 : vector<8x32xf32>
    %266 = math.tanh %265 : vector<8x32xf32>
    %267 = arith.mulf %262, %266 : vector<8x32xf32>
    %c8_i32_48 = arith.constant 8 : i32
    %268 = arith.muli %c5_i32, %c8_i32_48 : i32
    %269 = tpu.assume_multiple %268, 8 : i32
    %270 = arith.index_cast %269 : i32 to index
    %c0_49 = arith.constant 0 : index
    %271 = vector.load %arg9[%270, %c0_49] : memref<64x32xf32, #tpu.memory_space<vmem>>, vector<8x32xf32>
    tpu.vector_store %arg9[%270, %c0_49], %267 {strides = array<i32>} : memref<64x32xf32, #tpu.memory_space<vmem>>, vector<8x32xf32>,
    %c6_i32 = arith.constant 6 : i32
    %cst_50 = arith.constant dense<0.000000e+00> : vector<8x128xf32>
    %272 = tpu.matmul %247, %6, %cst_50 {dimension_numbers = #tpu.dot_dimension_numbers<[1], [0], [0], [1], [0, 0, 1, 1], [], []>} : vector<8x32xf32>, vector<32x128xf32>, vector<8x128xf32> -> vector<8x128xf32>
    %273 = vector.broadcast %8 : vector<1x128xf32> to vector<8x128xf32>
    %274 = arith.addf %272, %273 : vector<8x128xf32>
    %275 = vector.extract_strided_slice %274 {offsets = [0, 0], sizes = [8, 96], strides = [1, 1]} : vector<8x128xf32> to vector<8x96xf32>
    %276 = arith.negf %275 : vector<8x96xf32>
    %277 = math.exp %276 : vector<8x96xf32>
    %cst_51 = arith.constant 1.000000e+00 : f32
    %278 = vector.broadcast %cst_51 : f32 to vector<8x96xf32>
    %279 = arith.addf %278, %277 : vector<8x96xf32>
    %280 = arith.divf %278, %279 : vector<8x96xf32>
    %281 = vector.extract_strided_slice %274 {offsets = [0, 96], sizes = [8, 32], strides = [1, 1]} : vector<8x128xf32> to vector<8x32xf32>
    %282 = math.tanh %281 : vector<8x32xf32>
    %283 = vector.extract_strided_slice %280 {offsets = [0, 0], sizes = [8, 32], strides = [1, 1]} : vector<8x96xf32> to vector<8x32xf32>
    %284 = vector.extract_strided_slice %280 {offsets = [0, 32], sizes = [8, 32], strides = [1, 1]} : vector<8x96xf32> to vector<8x32xf32>
    %285 = vector.extract_strided_slice %280 {offsets = [0, 64], sizes = [8, 32], strides = [1, 1]} : vector<8x96xf32> to vector<8x32xf32>
    %286 = arith.mulf %284, %245 : vector<8x32xf32>
    %287 = arith.mulf %283, %282 : vector<8x32xf32>
    %288 = arith.addf %286, %287 : vector<8x32xf32>
    %289 = math.tanh %288 : vector<8x32xf32>
    %290 = arith.mulf %285, %289 : vector<8x32xf32>
    %291 = tpu.concatenate %290, %267 in 1 : vector<8x32xf32>, vector<8x32xf32> -> vector<8x64xf32>
    %cst_52 = arith.constant dense<0.000000e+00> : vector<8x128xf32>
    %292 = tpu.matmul %291, %9, %cst_52 {dimension_numbers = #tpu.dot_dimension_numbers<[1], [0], [0], [1], [0, 0, 1, 1], [], []>} : vector<8x64xf32>, vector<64x128xf32>, vector<8x128xf32> -> vector<8x128xf32>
    %293 = vector.broadcast %11 : vector<1x128xf32> to vector<8x128xf32>
    %294 = arith.addf %292, %293 : vector<8x128xf32>
    %295 = vector.extract_strided_slice %294 {offsets = [0, 0], sizes = [8, 96], strides = [1, 1]} : vector<8x128xf32> to vector<8x96xf32>
    %296 = arith.negf %295 : vector<8x96xf32>
    %297 = math.exp %296 : vector<8x96xf32>
    %cst_53 = arith.constant 1.000000e+00 : f32
    %298 = vector.broadcast %cst_53 : f32 to vector<8x96xf32>
    %299 = arith.addf %298, %297 : vector<8x96xf32>
    %300 = arith.divf %298, %299 : vector<8x96xf32>
    %301 = vector.extract_strided_slice %294 {offsets = [0, 96], sizes = [8, 32], strides = [1, 1]} : vector<8x128xf32> to vector<8x32xf32>
    %302 = math.tanh %301 : vector<8x32xf32>
    %303 = vector.extract_strided_slice %300 {offsets = [0, 0], sizes = [8, 32], strides = [1, 1]} : vector<8x96xf32> to vector<8x32xf32>
    %304 = vector.extract_strided_slice %300 {offsets = [0, 32], sizes = [8, 32], strides = [1, 1]} : vector<8x96xf32> to vector<8x32xf32>
    %305 = vector.extract_strided_slice %300 {offsets = [0, 64], sizes = [8, 32], strides = [1, 1]} : vector<8x96xf32> to vector<8x32xf32>
    %306 = arith.mulf %304, %265 : vector<8x32xf32>
    %307 = arith.mulf %303, %302 : vector<8x32xf32>
    %308 = arith.addf %306, %307 : vector<8x32xf32>
    %309 = math.tanh %308 : vector<8x32xf32>
    %310 = arith.mulf %305, %309 : vector<8x32xf32>
    %c8_i32_54 = arith.constant 8 : i32
    %311 = arith.muli %c6_i32, %c8_i32_54 : i32
    %312 = tpu.assume_multiple %311, 8 : i32
    %313 = arith.index_cast %312 : i32 to index
    %c0_55 = arith.constant 0 : index
    %314 = vector.load %arg9[%313, %c0_55] : memref<64x32xf32, #tpu.memory_space<vmem>>, vector<8x32xf32>
    tpu.vector_store %arg9[%313, %c0_55], %310 {strides = array<i32>} : memref<64x32xf32, #tpu.memory_space<vmem>>, vector<8x32xf32>,
    %c7_i32 = arith.constant 7 : i32
    %cst_56 = arith.constant dense<0.000000e+00> : vector<8x128xf32>
    %315 = tpu.matmul %290, %6, %cst_56 {dimension_numbers = #tpu.dot_dimension_numbers<[1], [0], [0], [1], [0, 0, 1, 1], [], []>} : vector<8x32xf32>, vector<32x128xf32>, vector<8x128xf32> -> vector<8x128xf32>
    %316 = vector.broadcast %8 : vector<1x128xf32> to vector<8x128xf32>
    %317 = arith.addf %315, %316 : vector<8x128xf32>
    %318 = vector.extract_strided_slice %317 {offsets = [0, 0], sizes = [8, 96], strides = [1, 1]} : vector<8x128xf32> to vector<8x96xf32>
    %319 = arith.negf %318 : vector<8x96xf32>
    %320 = math.exp %319 : vector<8x96xf32>
    %cst_57 = arith.constant 1.000000e+00 : f32
    %321 = vector.broadcast %cst_57 : f32 to vector<8x96xf32>
    %322 = arith.addf %321, %320 : vector<8x96xf32>
    %323 = arith.divf %321, %322 : vector<8x96xf32>
    %324 = vector.extract_strided_slice %317 {offsets = [0, 96], sizes = [8, 32], strides = [1, 1]} : vector<8x128xf32> to vector<8x32xf32>
    %325 = math.tanh %324 : vector<8x32xf32>
    %326 = vector.extract_strided_slice %323 {offsets = [0, 0], sizes = [8, 32], strides = [1, 1]} : vector<8x96xf32> to vector<8x32xf32>
    %327 = vector.extract_strided_slice %323 {offsets = [0, 32], sizes = [8, 32], strides = [1, 1]} : vector<8x96xf32> to vector<8x32xf32>
    %328 = vector.extract_strided_slice %323 {offsets = [0, 64], sizes = [8, 32], strides = [1, 1]} : vector<8x96xf32> to vector<8x32xf32>
    %329 = arith.mulf %327, %288 : vector<8x32xf32>
    %330 = arith.mulf %326, %325 : vector<8x32xf32>
    %331 = arith.addf %329, %330 : vector<8x32xf32>
    %332 = math.tanh %331 : vector<8x32xf32>
    %333 = arith.mulf %328, %332 : vector<8x32xf32>
    %334 = tpu.concatenate %333, %310 in 1 : vector<8x32xf32>, vector<8x32xf32> -> vector<8x64xf32>
    %cst_58 = arith.constant dense<0.000000e+00> : vector<8x128xf32>
    %335 = tpu.matmul %334, %9, %cst_58 {dimension_numbers = #tpu.dot_dimension_numbers<[1], [0], [0], [1], [0, 0, 1, 1], [], []>} : vector<8x64xf32>, vector<64x128xf32>, vector<8x128xf32> -> vector<8x128xf32>
    %336 = vector.broadcast %11 : vector<1x128xf32> to vector<8x128xf32>
    %337 = arith.addf %335, %336 : vector<8x128xf32>
    %338 = vector.extract_strided_slice %337 {offsets = [0, 0], sizes = [8, 96], strides = [1, 1]} : vector<8x128xf32> to vector<8x96xf32>
    %339 = arith.negf %338 : vector<8x96xf32>
    %340 = math.exp %339 : vector<8x96xf32>
    %cst_59 = arith.constant 1.000000e+00 : f32
    %341 = vector.broadcast %cst_59 : f32 to vector<8x96xf32>
    %342 = arith.addf %341, %340 : vector<8x96xf32>
    %343 = arith.divf %341, %342 : vector<8x96xf32>
    %344 = vector.extract_strided_slice %337 {offsets = [0, 96], sizes = [8, 32], strides = [1, 1]} : vector<8x128xf32> to vector<8x32xf32>
    %345 = math.tanh %344 : vector<8x32xf32>
    %346 = vector.extract_strided_slice %343 {offsets = [0, 0], sizes = [8, 32], strides = [1, 1]} : vector<8x96xf32> to vector<8x32xf32>
    %347 = vector.extract_strided_slice %343 {offsets = [0, 32], sizes = [8, 32], strides = [1, 1]} : vector<8x96xf32> to vector<8x32xf32>
    %348 = vector.extract_strided_slice %343 {offsets = [0, 64], sizes = [8, 32], strides = [1, 1]} : vector<8x96xf32> to vector<8x32xf32>
    %349 = arith.mulf %347, %308 : vector<8x32xf32>
    %350 = arith.mulf %346, %345 : vector<8x32xf32>
    %351 = arith.addf %349, %350 : vector<8x32xf32>
    %352 = math.tanh %351 : vector<8x32xf32>
    %353 = arith.mulf %348, %352 : vector<8x32xf32>
    %c8_i32_60 = arith.constant 8 : i32
    %354 = arith.muli %c7_i32, %c8_i32_60 : i32
    %355 = tpu.assume_multiple %354, 8 : i32
    %356 = arith.index_cast %355 : i32 to index
    %c0_61 = arith.constant 0 : index
    %357 = vector.load %arg9[%356, %c0_61] : memref<64x32xf32, #tpu.memory_space<vmem>>, vector<8x32xf32>
    tpu.vector_store %arg9[%356, %c0_61], %353 {strides = array<i32>} : memref<64x32xf32, #tpu.memory_space<vmem>>, vector<8x32xf32>,
    %c8_i32_62 = arith.constant 8 : i32
    %c0_63 = arith.constant 0 : index
    %c0_64 = arith.constant 0 : index
    %358 = vector.load %arg9[%c0_63, %c0_64] : memref<64x32xf32, #tpu.memory_space<vmem>>, vector<64x32xf32>
    %c0_65 = arith.constant 0 : index
    %c0_66 = arith.constant 0 : index
    %359 = vector.load %arg6[%c0_65, %c0_66] : memref<32x128xf32, #tpu.memory_space<vmem>>, vector<32x128xf32>
    %cst_67 = arith.constant dense<0.000000e+00> : vector<64x128xf32>
    %360 = tpu.matmul %358, %359, %cst_67 {dimension_numbers = #tpu.dot_dimension_numbers<[1], [0], [0], [1], [0, 0, 1, 1], [], []>} : vector<64x32xf32>, vector<32x128xf32>, vector<64x128xf32> -> vector<64x128xf32>
    %c0_68 = arith.constant 0 : index
    %c0_69 = arith.constant 0 : index
    %361 = vector.load %arg7[%c0_68, %c0_69] : memref<1x128xf32, #tpu.memory_space<vmem>>, vector<1x128xf32>
    %362 = vector.broadcast %361 : vector<1x128xf32> to vector<64x128xf32>
    %363 = arith.addf %360, %362 : vector<64x128xf32>
    %364 = vector.shape_cast %363 : vector<64x128xf32> to vector<8x8x128xf32>
    %c0_70 = arith.constant 0 : index
    %c0_71 = arith.constant 0 : index
    %c0_72 = arith.constant 0 : index
    %365 = vector.load %arg8[%c0_70, %c0_71, %c0_72] : memref<8x8x128xf32, #tpu.memory_space<vmem>>, vector<8x8x128xf32>
    tpu.vector_store %arg8[%c0_70, %c0_71, %c0_72], %364 {strides = array<i32>} : memref<8x8x128xf32, #tpu.memory_space<vmem>>, vector<8x8x128xf32>,
    return
  }
  func.func @transform_0(%arg0: i32) -> (i32, i32) {
    %c0_i32 = arith.constant 0 : i32
    %c0_i32_0 = arith.constant 0 : i32
    return %arg0, %c0_i32 : i32, i32
  }
  func.func @transform_1(%arg0: i32) -> (i32, i32) {
    %c0_i32 = arith.constant 0 : i32
    %c0_i32_0 = arith.constant 0 : i32
    %c0_i32_1 = arith.constant 0 : i32
    return %c0_i32, %c0_i32_0 : i32, i32
  }
  func.func @transform_2(%arg0: i32) -> (i32, i32) {
    %c0_i32 = arith.constant 0 : i32
    %c0_i32_0 = arith.constant 0 : i32
    %c0_i32_1 = arith.constant 0 : i32
    return %c0_i32, %c0_i32_0 : i32, i32
  }
  func.func @transform_3(%arg0: i32) -> (i32, i32) {
    %c0_i32 = arith.constant 0 : i32
    %c0_i32_0 = arith.constant 0 : i32
    %c0_i32_1 = arith.constant 0 : i32
    return %c0_i32, %c0_i32_0 : i32, i32
  }
  func.func @transform_4(%arg0: i32) -> (i32, i32, i32) {
    %c0_i32 = arith.constant 0 : i32
    %c0_i32_0 = arith.constant 0 : i32
    %c0_i32_1 = arith.constant 0 : i32
    %c0_i32_2 = arith.constant 0 : i32
    return %c0_i32, %c0_i32_0, %c0_i32_1 : i32, i32, i32
  }
  func.func @transform_5(%arg0: i32) -> (i32, i32) {
    %c0_i32 = arith.constant 0 : i32
    %c0_i32_0 = arith.constant 0 : i32
    %c0_i32_1 = arith.constant 0 : i32
    return %c0_i32, %c0_i32_0 : i32, i32
  }
  func.func @transform_6(%arg0: i32) -> (i32, i32) {
    %c0_i32 = arith.constant 0 : i32
    %c0_i32_0 = arith.constant 0 : i32
    %c0_i32_1 = arith.constant 0 : i32
    return %c0_i32, %c0_i32_0 : i32, i32
  }
  func.func @transform_7(%arg0: i32) -> (i32, i32, i32) {
    %c0_i32 = arith.constant 0 : i32
    %c0_i32_0 = arith.constant 0 : i32
    %c0_i32_1 = arith.constant 0 : i32
    return %c0_i32, %arg0, %c0_i32_0 : i32, i32, i32
  }
}

</mosaic_0001>

<bundles_post_ra>
// kernel: tpu_custom_call.1
= control target key start
LH: loop header
LB: loop body
LE: loop exit
PB: predicated region body
PF: predicated region fallthrough
CT: control target
= control target key end

     0   :  { %12 = vsyncpa [#allocation4], 0  ;;  %s2066_s0 = inlined_call_operand.hbm [shape: f32[8,16], index: 0, kind: input, shape index: {}]   ;;  %s2067_s1 = inlined_call_operand.hbm [shape: f32[16,32], index: 1, kind: input, shape index: {}]   ;;  %s2068_s2 = inlined_call_operand.vmem [shape: f32[1,32], index: 2, kind: input, shape index: {}]   ;;  %s2069_s3 = inlined_call_operand.hbm [shape: f32[96,128], index: 3, kind: input, shape index: {}]   ;;  %s2070_s4 = inlined_call_operand.vmem [shape: f32[2,1,128], index: 4, kind: input, shape index: {}]   ;;  %s2071_s5 = inlined_call_operand.hbm [shape: f32[32,128], index: 5, kind: input, shape index: {}]   ;;  %s2072_s6 = inlined_call_operand.vmem [shape: f32[1,128], index: 6, kind: input, shape index: {}]   ;;  %s2073_s7 = inlined_call_operand.hbm [shape: f32[8,8,128], index: 7, kind: output, shape index: {}]  }
   0x1   :  { %13 = vsyncpa [#allocation7], 0 }
   0x2   :  { %14 = vsyncpa [#allocation10], 0  ;;  %s31_s26 = sshll.u32 %s2067_s1, 4  ;;  %s32_s26 = int_to_ptr.hbm [resolvable:$true] %s31_s26 }
   0x3   :  { %15 = vsyncpa [#allocation5], 0  ;;  %s1634_s27 = smov [#allocation6]   ;;  %s21_s8 = sshll.u32 %s2066_s0, 4  ;;  %s22_s8 = int_to_ptr.hbm [resolvable:$true] %s21_s8 }
   0x4   :  { %s33_s28 = sshll.u32 %s1634_s27, 4  ;;  %s1635_s9 = smov 128   ;;  %s34_s28 = int_to_ptr.vmem [resolvable:$true] %s33_s28 }
   0x5   :  { %s1636_s10 = smov 8   ;;  %s1637_s11 = smov [#allocation3]  }
   0x6   :  { %39 = dma.hbm_to_vmem [thread:$0]  %s32_s26, 256, %s34_s28, [#allocation7], %s1635_s9, %s1635_s9, %s1636_s10  }
   0x7   :  { %s23_s12 = sshll.u32 %s1637_s11, 4  ;;  %s46_s14 = sshll.u32 %s2069_s3, 4  ;;  %s24_s12 = int_to_ptr.vmem [resolvable:$true] %s23_s12  ;;  %s47_s14 = int_to_ptr.hbm [resolvable:$true] %s46_s14 }
   0x8   :  { %26 = dma.hbm_to_vmem [thread:$0]  %s22_s8, 128, %s24_s12, [#allocation4]  }
   0x9   :  { %s61_s0 = sshll.u32 %s2071_s5, 4  ;;  %s1638_s17 = smov [#allocation8]   ;;  %s62_s0 = int_to_ptr.hbm [resolvable:$true] %s61_s0 }
   0xa   :  { %s48_s18 = sshll.u32 %s1638_s17, 4  ;;  %s1639_s19 = smov [#allocation9]   ;;  %s49_s18 = int_to_ptr.vmem [resolvable:$true] %s48_s18 }
   0xb   :  { %54 = dma.hbm_to_vmem [thread:$0]  %s47_s14, 1536, %s49_s18, [#allocation7], %s1635_s9, %s1635_s9, %s1636_s10  }
   0xc   :  { %s63_s20 = sshll.u32 %s1639_s19, 4  ;;  %s64_s20 = int_to_ptr.vmem [resolvable:$true] %s63_s20 }
   0xd   :  { %69 = dma.hbm_to_vmem [thread:$0]  %s62_s0, 512, %s64_s20, [#allocation10], %s1635_s9, %s1635_s9, %s1636_s10  }
   0xe   :  { %1626 = dma.done.wait [#allocation4], 128  }
   0xf   :  { %1627 = vsyncadd [#allocation4], 4294967168 }
  0x10   :  { %1628 = dma.done.wait [#allocation7], 1792  }
  0x11   :  { %1629 = vsyncadd [#allocation7], 4294965504 }
  0x12   :  { %1630 = dma.done.wait [#allocation10], 512  }
  0x13   :  { %1631 = vsyncadd [#allocation10], 4294966784  ;;  %v90_v0 = vld [vmem:[#allocation6 + $0x8] sm:$0xff]  ;;  %v89_v1 = vld [vmem:[#allocation6] sm:$0xff]  ;;  %vm95_vm0 = vcmask 130048   ;;  %vm137_vm1 = vcmask 261120  }
  0x14   :  { %v88_v2 = vld [vmem:[#allocation3] sm:$0xff]  ;;  %113 = vmatpush.msra.mxu0 %v90_v0  ;;  %v1705_v3 = vld [vmem:[#allocation8 + $0x18] sm:$0xff]  ;;  %v1707_v4 = vld [vmem:[#allocation8 + $0x10] sm:$0xff]  ;;  %s1640_s21 = smov 32   ;;  %vm209_vm6 = vcmask 523264   ;;  %s1642_s26 = smov 96  }
  0x15   :  { %153 = vmatpush.msra.mxu2 %v1705_v3  ;;  %289 = vmatpush.msra.mxu3 %v1705_v3  ;;  %v1715_v5 = vld [vmem:[#allocation8 + $0x8] sm:$0xff]  ;;  %v1719_v6 = vld [vmem:[#allocation8] sm:$0xff]  ;;  %v1746_v33 = vld [vmem:[#allocation8 + $0x58] sm:$0xff]  ;;  %s1301_s1 = sshll.u32 %s2073_s7, 4  ;;  %s1302_s1 = int_to_ptr.hbm [resolvable:$true] %s1301_s1 }
  0x16   :  { %114 = vmatpush.msra.mxu0 %v89_v1  ;;  %422 = vmatpush.msra.mxu1 %v1705_v3  ;;  %v1372_v7 = vld [vmem:[%s2068_s2] ss:$0 sm:$0xff]  ;;  %v1748_v34 = vld [vmem:[#allocation8 + $0x50] sm:$0xff]  ;;  %v1757_v36 = vld [vmem:[#allocation8 + $0x40] sm:$0xff]  ;;  %s1641_s2 = smov 64  }
  0x17   :  { %1316 = vmatmul.msk.f32.vlgmr.msra.gmra.mxu0 %vm95_vm0, %v88_v2  ;;  %154 = vmatpush.msra.mxu2 %v1707_v4  ;;  %v1737_v10 = vld [vmem:[%s2070_s4] ss:$0 sm:$0xff]  ;;  %v1762_v37 = vld [vmem:[#allocation8 + $0x38] sm:$0xff]  ;;  %v1767_v38 = vld [vmem:[#allocation8 + $0x30] sm:$0xff] }
  0x18   :  { %290 = vmatpush.msra.mxu3 %v1707_v4  ;;  %423 = vmatpush.msra.mxu1 %v1707_v4  ;;  %v1752_v35 = vld [vmem:[#allocation8 + $0x48] sm:$0xff]  ;;  %v1782_v42 = vld [vmem:[#allocation8 + $0x20] sm:$0xff] }
  0x19   :  { %155 = vmatpush.msra.mxu2 %v1715_v5  ;;  %353 = vmatpush.msrb.mxu0 %v1746_v33  ;;  %v1772_v39 = vld [vmem:[#allocation8 + $0x28] sm:$0xff] }
  0x1a   :  { %291 = vmatpush.msra.mxu3 %v1715_v5  ;;  %424 = vmatpush.msra.mxu1 %v1715_v5  ;;  %v1817_v46 = vld [vmem:[%s2070_s4 + $0x1] ss:$0 sm:$0xff] }
  0x1b   :  { %156 = vmatpush.msra.mxu2 %v1719_v6  ;;  %354 = vmatpush.msrb.mxu0 %v1748_v34 }
  0x1c   :  { %292 = vmatpush.msra.mxu3 %v1719_v6  ;;  %425 = vmatpush.msra.mxu1 %v1719_v6 }
  0x1d   :  { %221 = vmatpush.msrb.mxu2 %v1746_v33  ;;  %355 = vmatpush.msrb.mxu0 %v1752_v35 }
  0x1e   :  { %555 = vmatpush.msrb.mxu1 %v1705_v3  ;;  %486 = vmatpush.msrb.mxu3 %v1746_v33 }
  0x1f   :  { %222 = vmatpush.msrb.mxu2 %v1748_v34  ;;  %356 = vmatpush.msrb.mxu0 %v1757_v36 }
  0x20   :  { %556 = vmatpush.msrb.mxu1 %v1707_v4  ;;  %487 = vmatpush.msrb.mxu3 %v1748_v34 }
  0x21   :  { %223 = vmatpush.msrb.mxu2 %v1752_v35  ;;  %357 = vmatpush.msrb.mxu0 %v1762_v37 }
  0x22   :  { %557 = vmatpush.msrb.mxu1 %v1715_v5  ;;  %488 = vmatpush.msrb.mxu3 %v1752_v35 }
  0x23   :  { %224 = vmatpush.msrb.mxu2 %v1757_v36  ;;  %358 = vmatpush.msrb.mxu0 %v1767_v38 }
  0x24   :  { %558 = vmatpush.msrb.mxu1 %v1719_v6  ;;  %489 = vmatpush.msrb.mxu3 %v1757_v36 }
  0x25   :  { %225 = vmatpush.msrb.mxu2 %v1762_v37  ;;  %359 = vmatpush.msrb.mxu0 %v1772_v39 }
  0x26   :  { %490 = vmatpush.msrb.mxu3 %v1762_v37 }
  0x27   :  { %226 = vmatpush.msrb.mxu2 %v1767_v38  ;;  %360 = vmatpush.msrb.mxu0 %v1782_v42 }
  0x28   :  { %491 = vmatpush.msrb.mxu3 %v1767_v38 }
  0x29   :  { %227 = vmatpush.msrb.mxu2 %v1772_v39  ;;  %688 = vmatpush.msra.mxu0 %v1705_v3 }
  0x2a   :  { %492 = vmatpush.msrb.mxu3 %v1772_v39 }
  0x2b   :  { %228 = vmatpush.msrb.mxu2 %v1782_v42  ;;  %689 = vmatpush.msra.mxu0 %v1707_v4 }
  0x2c   :  { %493 = vmatpush.msrb.mxu3 %v1782_v42 }
  0x2d   :  { %690 = vmatpush.msra.mxu0 %v1715_v5 }
  0x2f   :  { %691 = vmatpush.msra.mxu0 %v1719_v6 }
  0x94   :  { %v116_v8 = vpop.f32.mrf.mxu0 }
  0x95   :  { %v117_v9 = vadd.f32 %v1372_v7, %v116_v8 }
  0x97   :  { %202 = vrot.lane.b32.xlu2 %v117_v9, %s1640_s21  ;;  %1318 = vmatmul.msk.f32.vlgmr.msra.gmra.mxu2 %vm137_vm1, %v117_v9 }
  0x98   :  { %619 = vmatpush.msra.mxu2 %v1746_v33 }
  0x9a   :  { %620 = vmatpush.msra.mxu2 %v1748_v34 }
  0x9c   :  { %621 = vmatpush.msra.mxu2 %v1752_v35 }
  0x9e   :  { %622 = vmatpush.msra.mxu2 %v1757_v36 }
  0xa0   :  { %623 = vmatpush.msra.mxu2 %v1762_v37 }
  0xa2   :  { %624 = vmatpush.msra.mxu2 %v1767_v38 }
  0xa4   :  { %625 = vmatpush.msra.mxu2 %v1772_v39 }
  0xa6   :  { %626 = vmatpush.msra.mxu2 %v1782_v42 }
  0xf1   :  { %v203_v43 = vpop.permute.xlu2 %202 }
 0x11a   :  { %v158_v11 = vpop.f32.mrf.mxu2 }
 0x11b   :  { %v159_v12 = vadd.f32 %v1737_v10, %v158_v11 }
 0x11d   :  { %1376 = vtanh.f32 %v159_v12  ;;  %v1319_v14 = vmul.f32 -1.442695, %v159_v12 }
 0x11f   :  { %1378 = vpow2.f32 %v1319_v14 }
 0x123   :  { %v1377_v13 = vpop.eup %1376 }
 0x124   :  { %183 = vrot.lane.b32.xlu0 %v1377_v13, %s1640_s21 }
 0x125   :  { %v1379_v15 = vpop.eup %1378 }
 0x126   :  { %v164_v16 = vadd.f32 1.0, %v1379_v15 }
 0x128   :  { %1380 = vrcp.f32 %v164_v16  ;;  %v176_v22 = vand.u32 2147483648, %v164_v16  ;;  %vm170_vm3 = vweird.f32 %v164_v16  ;;  %v174_v23 = vand.u32 2147483647, %v164_v16 }
 0x12a   :  { %v177_v25 = vor.u32 1.1754944e-38, %v176_v22  ;;  %vm175_vm5 = vcmp.eq.f32.partialorder %v174_v23, 8.507059e+37 }
 0x12e   :  { %v1381_v17 = vpop.eup %1380 }
 0x12f   :  { %v166_v18 = vmul.f32 %v1381_v17, %v164_v16  ;;  %vm171_vm2 = vweird.f32 %v1381_v17 }
 0x130   :  { %vm172_vm4 = vmor %vm170_vm3, %vm171_vm2 }
 0x131   :  { %v167_v19 = vsub.f32 1.0, %v166_v18 }
 0x133   :  { %v168_v20 = vmul.f32 %v1381_v17, %v167_v19 }
 0x135   :  { %v169_v21 = vadd.f32 %v1381_v17, %v168_v20 }
 0x137   :  { %v173_v24 = vsel %vm172_vm4, %v1381_v17, %v169_v21 }
 0x138   :  { %v178_v27 = vsel %vm175_vm5, %v177_v25, %v173_v24 }
 0x139   :  { %v181_v29 = vmul.f32 0.0, %v178_v27 }
 0x196   :  { %v184_v26 = vpop.permute.xlu0 %183 }
 0x197   :  { %v186_v28 = vmul.f32 %v184_v26, %v178_v27 }
 0x199   :  { %188 = vrot.lane.b32.xlu0 %v186_v28, %s1640_s21 }
 0x20b   :  { %v189_v30 = vpop.permute.xlu0 %188 }
 0x20c   :  { %v1742_v31 = vadd.f32 %v189_v30, %v181_v29 }
 0x20e   :  { %1382 = vtanh.f32 %v1742_v31 }
 0x214   :  { %v1383_v32 = vpop.eup %1382 }
 0x215   :  { %194 = vrot.lane.b32.xlu1 %v1383_v32, %s1640_s21 }
 0x287   :  { %v195_v40 = vpop.permute.xlu1 %194 }
 0x288   :  { %v197_v41 = vmul.f32 %v195_v40, %v178_v27 }
 0x28a   :  { %199 = vrot.lane.b32.xlu1 %v197_v41, %s1641_s2 }
 0x2fc   :  { %v200_v44 = vpop.permute.xlu1 %199 }
 0x2fd   :  { %v205_v45 = vsel %vm137_vm1, %v200_v44, %v203_v43  ;;  %1322 = vmatmul.msk.f32.vlgmr.msra.gmra.mxu3 %vm137_vm1, %v200_v44 }
 0x2fe   :  { %1320 = vmatmul.msk.f32.vlgmr.msrb.gmra.mxu2 %vm209_vm6, %v205_v45  ;;  %752 = vmatpush.msra.mxu3 %v1746_v33 }
 0x2ff   :  { %954 = vmatpush.msrb.mxu2 %v1705_v3 }
 0x300   :  { %753 = vmatpush.msra.mxu3 %v1748_v34 }
 0x301   :  { %955 = vmatpush.msrb.mxu2 %v1707_v4 }
 0x302   :  { %754 = vmatpush.msra.mxu3 %v1752_v35 }
 0x303   :  { %956 = vmatpush.msrb.mxu2 %v1715_v5 }
 0x304   :  { %755 = vmatpush.msra.mxu3 %v1757_v36 }
 0x305   :  { %957 = vmatpush.msrb.mxu2 %v1719_v6 }
 0x306   :  { %756 = vmatpush.msra.mxu3 %v1762_v37 }
 0x308   :  { %757 = vmatpush.msra.mxu3 %v1767_v38 }
 0x30a   :  { %758 = vmatpush.msra.mxu3 %v1772_v39 }
 0x30c   :  { %759 = vmatpush.msra.mxu3 %v1782_v42 }
 0x380   :  { %v294_v47 = vpop.f32.mrf.mxu3 }
 0x381   :  { %v295_v48 = vadd.f32 %v1737_v10, %v294_v47  ;;  %v230_v49 = vpop.f32.mrf.mxu2 }
 0x382   :  { %v231_v50 = vadd.f32 %v1817_v46, %v230_v49 }
 0x383   :  { %1384 = vtanh.f32 %v295_v48  ;;  %v1323_v57 = vmul.f32 -1.442695, %v295_v48 }
 0x384   :  { %1386 = vtanh.f32 %v231_v50  ;;  %v1321_v53 = vmul.f32 -1.442695, %v231_v50 }
 0x386   :  { %1388 = vpow2.f32 %v1321_v53 }
 0x389   :  { %v1385_v51 = vpop.eup %1384 }
 0x38a   :  { %v1387_v52 = vpop.eup %1386  ;;  %319 = vrot.lane.b32.xlu0 %v1385_v51, %s1640_s21 }
 0x38b   :  { %255 = vrot.lane.b32.xlu2 %v1387_v52, %s1640_s21 }
 0x38c   :  { %v1389_v54 = vpop.eup %1388 }
 0x38d   :  { %v236_v55 = vadd.f32 1.0, %v1389_v54 }
 0x38f   :  { %1390 = vrcp.f32 %v236_v55  ;;  %v248_v0 = vand.u32 2147483648, %v236_v55  ;;  %vm242_vm8 = vweird.f32 %v236_v55  ;;  %v246_v1 = vand.u32 2147483647, %v236_v55 }
 0x390   :  { %1392 = vpow2.f32 %v1323_v57 }
 0x391   :  { %v249_v7 = vor.u32 1.1754944e-38, %v248_v0  ;;  %vm247_vm10 = vcmp.eq.f32.partialorder %v246_v1, 8.507059e+37 }
 0x395   :  { %v1391_v56 = vpop.eup %1390 }
 0x396   :  { %v238_v58 = vmul.f32 %v1391_v56, %v236_v55  ;;  %v1393_v60 = vpop.eup %1392  ;;  %vm243_vm7 = vweird.f32 %v1391_v56 }
 0x397   :  { %v300_v62 = vadd.f32 1.0, %v1393_v60  ;;  %vm244_vm9 = vmor %vm242_vm8, %vm243_vm7 }
 0x398   :  { %v239_v59 = vsub.f32 1.0, %v238_v58 }
 0x399   :  { %1394 = vrcp.f32 %v300_v62  ;;  %v312_v17 = vand.u32 2147483648, %v300_v62  ;;  %vm306_vm12 = vweird.f32 %v300_v62  ;;  %v310_v18 = vand.u32 2147483647, %v300_v62 }
 0x39a   :  { %v240_v61 = vmul.f32 %v1391_v56, %v239_v59 }
 0x39b   :  { %v313_v20 = vor.u32 1.1754944e-38, %v312_v17  ;;  %vm311_vm14 = vcmp.eq.f32.partialorder %v310_v18, 8.507059e+37 }
 0x39c   :  { %v241_v63 = vadd.f32 %v1391_v56, %v240_v61 }
 0x39e   :  { %v245_v2 = vsel %vm244_vm9, %v1391_v56, %v241_v63 }
 0x39f   :  { %v250_v9 = vsel %vm247_vm10, %v249_v7, %v245_v2  ;;  %v1395_v11 = vpop.eup %1394 }
 0x3a0   :  { %v302_v13 = vmul.f32 %v1395_v11, %v300_v62  ;;  %vm307_vm11 = vweird.f32 %v1395_v11  ;;  %v253_v26 = vmul.f32 0.0, %v250_v9 }
 0x3a1   :  { %vm308_vm13 = vmor %vm306_vm12, %vm307_vm11 }
 0x3a2   :  { %v303_v14 = vsub.f32 1.0, %v302_v13 }
 0x3a4   :  { %v304_v15 = vmul.f32 %v1395_v11, %v303_v14 }
 0x3a6   :  { %v305_v16 = vadd.f32 %v1395_v11, %v304_v15 }
 0x3a8   :  { %v309_v19 = vsel %vm308_vm13, %v1395_v11, %v305_v16 }
 0x3a9   :  { %v314_v22 = vsel %vm311_vm14, %v313_v20, %v309_v19 }
 0x3aa   :  { %v317_v24 = vmul.f32 %v314_v22, %v1742_v31 }
 0x3e5   :  { %v256_v8 = vpop.permute.xlu2 %255 }
 0x3e6   :  { %v258_v12 = vmul.f32 %v256_v8, %v250_v9 }
 0x3e8   :  { %260 = vrot.lane.b32.xlu1 %v258_v12, %s1640_s21 }
 0x3fc   :  { %v320_v21 = vpop.permute.xlu0 %319 }
 0x3fd   :  { %v322_v23 = vmul.f32 %v320_v21, %v314_v22 }
 0x3ff   :  { %324 = vrot.lane.b32.xlu2 %v322_v23, %s1640_s21 }
 0x459   :  { %v325_v25 = vpop.permute.xlu2 %324 }
 0x45a   :  { %v1826_v27 = vadd.f32 %v325_v25, %v317_v24  ;;  %v261_v28 = vpop.permute.xlu1 %260 }
 0x45b   :  { %v1828_v29 = vadd.f32 %v261_v28, %v253_v26 }
 0x45c   :  { %1396 = vtanh.f32 %v1826_v27 }
 0x45d   :  { %1398 = vtanh.f32 %v1828_v29 }
 0x462   :  { %v1397_v30 = vpop.eup %1396 }
 0x463   :  { %v1399_v32 = vpop.eup %1398  ;;  %330 = vrot.lane.b32.xlu1 %v1397_v30, %s1640_s21 }
 0x464   :  { %266 = vrot.lane.b32.xlu0 %v1399_v32, %s1640_s21 }
 0x4d5   :  { %v331_v40 = vpop.permute.xlu1 %330 }
 0x4d6   :  { %v333_v41 = vmul.f32 %v331_v40, %v314_v22  ;;  %v267_v31 = vpop.permute.xlu0 %266 }
 0x4d7   :  { %v1834_v43 = vmul.f32 %v267_v31, %v250_v9 }
 0x4d8   :  { %335 = vrot.lane.b32.xlu2 %v333_v41, %s1641_s2 }
 0x4d9   :  { %338 = vrot.lane.b32.xlu0 %v1834_v43, %s1642_s26 }
 0x532   :  { %v336_v44 = vpop.permute.xlu2 %335 }
 0x533   :  { %1326 = vmatmul.msk.f32.vlgmr.msra.gmra.mxu1 %vm137_vm1, %v336_v44 }
 0x534   :  { %1087 = vmatpush.msra.mxu1 %v1705_v3 }
 0x536   :  { %1088 = vmatpush.msra.mxu1 %v1707_v4 }
 0x538   :  { %1089 = vmatpush.msra.mxu1 %v1715_v5 }
 0x53a   :  { %1090 = vmatpush.msra.mxu1 %v1719_v6 }
 0x54b   :  { %v339_v45 = vpop.permute.xlu0 %338 }
 0x54c   :  { %v341_v47 = vsel %vm137_vm1, %v336_v44, %v339_v45 }
 0x54d   :  { %1324 = vmatmul.msk.f32.vlgmr.msrb.gmra.mxu0 %vm209_vm6, %v341_v47 }
 0x54e   :  { %885 = vmatpush.msrb.mxu0 %v1746_v33 }
 0x550   :  { %886 = vmatpush.msrb.mxu0 %v1748_v34 }
 0x552   :  { %887 = vmatpush.msrb.mxu0 %v1752_v35 }
 0x554   :  { %888 = vmatpush.msrb.mxu0 %v1757_v36 }
 0x556   :  { %889 = vmatpush.msrb.mxu0 %v1762_v37 }
 0x558   :  { %890 = vmatpush.msrb.mxu0 %v1767_v38 }
 0x55a   :  { %891 = vmatpush.msrb.mxu0 %v1772_v39 }
 0x55c   :  { %892 = vmatpush.msrb.mxu0 %v1782_v42 }
 0x5b0   :  { %v427_v48 = vpop.f32.mrf.mxu1 }
 0x5b1   :  { %v428_v49 = vadd.f32 %v1737_v10, %v427_v48 }
 0x5b3   :  { %1400 = vtanh.f32 %v428_v49  ;;  %v1327_v54 = vmul.f32 -1.442695, %v428_v49 }
 0x5b9   :  { %v1401_v50 = vpop.eup %1400 }
 0x5ba   :  { %452 = vrot.lane.b32.xlu2 %v1401_v50, %s1640_s21 }
 0x5ca   :  { %v362_v51 = vpop.f32.mrf.mxu0 }
 0x5cb   :  { %v363_v52 = vadd.f32 %v1817_v46, %v362_v51 }
 0x5cd   :  { %1402 = vtanh.f32 %v363_v52  ;;  %v1325_v9 = vmul.f32 -1.442695, %v363_v52 }
 0x5ce   :  { %1404 = vpow2.f32 %v1327_v54 }
 0x5d3   :  { %v1403_v53 = vpop.eup %1402 }
 0x5d4   :  { %387 = vrot.lane.b32.xlu1 %v1403_v53, %s1640_s21  ;;  %v1405_v55 = vpop.eup %1404 }
 0x5d5   :  { %v433_v56 = vadd.f32 1.0, %v1405_v55 }
 0x5d7   :  { %1406 = vrcp.f32 %v433_v56  ;;  %v445_v62 = vand.u32 2147483648, %v433_v56  ;;  %vm439_vm0 = vweird.f32 %v433_v56  ;;  %v443_v63 = vand.u32 2147483647, %v433_v56 }
 0x5d8   :  { %1408 = vpow2.f32 %v1325_v9 }
 0x5d9   :  { %v446_v1 = vor.u32 1.1754944e-38, %v445_v62  ;;  %vm444_vm3 = vcmp.eq.f32.partialorder %v443_v63, 8.507059e+37 }
 0x5dd   :  { %v1407_v57 = vpop.eup %1406 }
 0x5de   :  { %v435_v58 = vmul.f32 %v1407_v57, %v433_v56  ;;  %vm440_vm15 = vweird.f32 %v1407_v57  ;;  %v1409_v11 = vpop.eup %1408 }
 0x5df   :  { %vm441_vm2 = vmor %vm439_vm0, %vm440_vm15  ;;  %v368_v12 = vadd.f32 1.0, %v1409_v11 }
 0x5e0   :  { %v436_v59 = vsub.f32 1.0, %v435_v58 }
 0x5e1   :  { %1410 = vrcp.f32 %v368_v12  ;;  %v380_v18 = vand.u32 2147483648, %v368_v12  ;;  %vm374_vm5 = vweird.f32 %v368_v12  ;;  %v378_v19 = vand.u32 2147483647, %v368_v12 }
 0x5e2   :  { %v437_v60 = vmul.f32 %v1407_v57, %v436_v59 }
 0x5e3   :  { %v381_v21 = vor.u32 1.1754944e-38, %v380_v18  ;;  %vm379_vm8 = vcmp.eq.f32.partialorder %v378_v19, 8.507059e+37 }
 0x5e4   :  { %v438_v61 = vadd.f32 %v1407_v57, %v437_v60 }
 0x5e6   :  { %v442_v0 = vsel %vm441_vm2, %v1407_v57, %v438_v61 }
 0x5e7   :  { %v447_v7 = vsel %vm444_vm3, %v446_v1, %v442_v0  ;;  %v1411_v13 = vpop.eup %1410 }
 0x5e8   :  { %v370_v14 = vmul.f32 %v1411_v13, %v368_v12  ;;  %vm375_vm4 = vweird.f32 %v1411_v13  ;;  %v450_v25 = vmul.f32 %v447_v7, %v1826_v27 }
 0x5e9   :  { %vm376_vm7 = vmor %vm374_vm5, %vm375_vm4 }
 0x5ea   :  { %v371_v15 = vsub.f32 1.0, %v370_v14 }
 0x5ec   :  { %v372_v16 = vmul.f32 %v1411_v13, %v371_v15 }
 0x5ee   :  { %v373_v17 = vadd.f32 %v1411_v13, %v372_v16 }
 0x5f0   :  { %v377_v20 = vsel %vm376_vm7, %v1411_v13, %v373_v17 }
 0x5f1   :  { %v382_v23 = vsel %vm379_vm8, %v381_v21, %v377_v20 }
 0x5f2   :  { %v385_v32 = vmul.f32 %v382_v23, %v1828_v29 }
 0x614   :  { %v453_v2 = vpop.permute.xlu2 %452 }
 0x615   :  { %v455_v8 = vmul.f32 %v453_v2, %v447_v7 }
 0x617   :  { %457 = vrot.lane.b32.xlu1 %v455_v8, %s1640_s21 }
 0x646   :  { %v388_v22 = vpop.permute.xlu1 %387 }
 0x647   :  { %v390_v24 = vmul.f32 %v388_v22, %v382_v23 }
 0x649   :  { %392 = vrot.lane.b32.xlu0 %v390_v24, %s1640_s21 }
 0x689   :  { %v458_v26 = vpop.permute.xlu1 %457 }
 0x68a   :  { %v1861_v28 = vadd.f32 %v458_v26, %v450_v25 }
 0x68c   :  { %1412 = vtanh.f32 %v1861_v28 }
 0x692   :  { %v1413_v30 = vpop.eup %1412 }
 0x693   :  { %463 = vrot.lane.b32.xlu0 %v1413_v30, %s1640_s21 }
 0x6bb   :  { %v393_v40 = vpop.permute.xlu0 %392 }
 0x6bc   :  { %v1866_v41 = vadd.f32 %v393_v40, %v385_v32 }
 0x6be   :  { %1414 = vtanh.f32 %v1866_v41 }
 0x6c4   :  { %v1415_v31 = vpop.eup %1414 }
 0x6c5   :  { %398 = vrot.lane.b32.xlu2 %v1415_v31, %s1640_s21 }
 0x705   :  { %v464_v44 = vpop.permute.xlu0 %463 }
 0x706   :  { %v466_v27 = vmul.f32 %v464_v44, %v447_v7 }
 0x708   :  { %468 = vrot.lane.b32.xlu1 %v466_v27, %s1641_s2 }
 0x71f   :  { %v399_v45 = vpop.permute.xlu2 %398 }
 0x720   :  { %v1871_v47 = vmul.f32 %v399_v45, %v382_v23 }
 0x722   :  { %471 = vrot.lane.b32.xlu2 %v1871_v47, %s1642_s26 }
 0x77a   :  { %v469_v48 = vpop.permute.xlu1 %468 }
 0x77b   :  { %1330 = vmatmul.msk.f32.vlgmr.msrb.gmra.mxu1 %vm137_vm1, %v469_v48 }
 0x77c   :  { %v472_v29 = vpop.permute.xlu2 %471 }
 0x77d   :  { %v474_v49 = vsel %vm137_vm1, %v469_v48, %v472_v29 }
 0x77e   :  { %1328 = vmatmul.msk.f32.vlgmr.msrb.gmra.mxu3 %vm209_vm6, %v474_v49 }
 0x77f   :  { %821 = vmatpush.msrb.mxu3 %v1705_v3 }
 0x781   :  { %822 = vmatpush.msrb.mxu3 %v1707_v4 }
 0x783   :  { %823 = vmatpush.msrb.mxu3 %v1715_v5 }
 0x785   :  { %824 = vmatpush.msrb.mxu3 %v1719_v6 }
 0x7f8   :  { %v560_v50 = vpop.f32.mrf.mxu1 }
 0x7f9   :  { %v561_v51 = vadd.f32 %v1737_v10, %v560_v50 }
 0x7fb   :  { %1416 = vtanh.f32 %v561_v51  ;;  %v1331_v3 = vmul.f32 -1.442695, %v561_v51 }
 0x801   :  { %v1417_v52 = vpop.eup %1416  ;;  %v495_v53 = vpop.f32.mrf.mxu3 }
 0x802   :  { %v496_v54 = vadd.f32 %v1817_v46, %v495_v53  ;;  %585 = vrot.lane.b32.xlu1 %v1417_v52, %s1640_s21 }
 0x804   :  { %1418 = vtanh.f32 %v496_v54  ;;  %v1329_v4 = vmul.f32 -1.442695, %v496_v54 }
 0x805   :  { %1420 = vpow2.f32 %v1331_v3 }
 0x806   :  { %1422 = vpow2.f32 %v1329_v4 }
 0x80a   :  { %v1419_v55 = vpop.eup %1418 }
 0x80b   :  { %520 = vrot.lane.b32.xlu0 %v1419_v55, %s1640_s21  ;;  %v1421_v5 = vpop.eup %1420 }
 0x80c   :  { %v566_v56 = vadd.f32 1.0, %v1421_v5  ;;  %v1423_v6 = vpop.eup %1422 }
 0x80d   :  { %v501_v57 = vadd.f32 1.0, %v1423_v6 }
 0x80e   :  { %1424 = vrcp.f32 %v566_v56  ;;  %v578_v1 = vand.u32 2147483648, %v566_v56  ;;  %vm572_vm10 = vweird.f32 %v566_v56  ;;  %v576_v7 = vand.u32 2147483647, %v566_v56 }
 0x80f   :  { %1426 = vrcp.f32 %v501_v57  ;;  %v513_v16 = vand.u32 2147483648, %v501_v57  ;;  %vm507_vm14 = vweird.f32 %v501_v57  ;;  %v511_v17 = vand.u32 2147483647, %v501_v57 }
 0x810   :  { %v579_v9 = vor.u32 1.1754944e-38, %v578_v1  ;;  %vm577_vm12 = vcmp.eq.f32.partialorder %v576_v7, 8.507059e+37 }
 0x811   :  { %v514_v19 = vor.u32 1.1754944e-38, %v513_v16  ;;  %vm512_vm0 = vcmp.eq.f32.partialorder %v511_v17, 8.507059e+37 }
 0x814   :  { %v1425_v58 = vpop.eup %1424 }
 0x815   :  { %v568_v59 = vmul.f32 %v1425_v58, %v566_v56  ;;  %v1427_v61 = vpop.eup %1426  ;;  %vm573_vm9 = vweird.f32 %v1425_v58 }
 0x816   :  { %v503_v63 = vmul.f32 %v1427_v61, %v501_v57  ;;  %vm574_vm11 = vmor %vm572_vm10, %vm573_vm9  ;;  %vm508_vm13 = vweird.f32 %v1427_v61 }
 0x817   :  { %v569_v60 = vsub.f32 1.0, %v568_v59  ;;  %vm509_vm15 = vmor %vm507_vm14, %vm508_vm13 }
 0x818   :  { %v504_v2 = vsub.f32 1.0, %v503_v63 }
 0x819   :  { %v570_v62 = vmul.f32 %v1425_v58, %v569_v60 }
 0x81a   :  { %v505_v11 = vmul.f32 %v1427_v61, %v504_v2 }
 0x81b   :  { %v571_v0 = vadd.f32 %v1425_v58, %v570_v62 }
 0x81c   :  { %v506_v15 = vadd.f32 %v1427_v61, %v505_v11 }
 0x81d   :  { %v575_v8 = vsel %vm574_vm11, %v1425_v58, %v571_v0 }
 0x81e   :  { %v580_v13 = vsel %vm577_vm12, %v579_v9, %v575_v8  ;;  %v510_v18 = vsel %vm509_vm15, %v1427_v61, %v506_v15 }
 0x81f   :  { %v515_v21 = vsel %vm512_vm0, %v514_v19, %v510_v18  ;;  %v583_v30 = vmul.f32 %v580_v13, %v1861_v28 }
 0x820   :  { %v518_v23 = vmul.f32 %v515_v21, %v1866_v41 }
 0x874   :  { %v586_v12 = vpop.permute.xlu1 %585 }
 0x875   :  { %v588_v14 = vmul.f32 %v586_v12, %v580_v13 }
 0x877   :  { %590 = vrot.lane.b32.xlu0 %v588_v14, %s1640_s21 }
 0x87d   :  { %v521_v20 = vpop.permute.xlu0 %520 }
 0x87e   :  { %v523_v22 = vmul.f32 %v521_v20, %v515_v21 }
 0x880   :  { %525 = vrot.lane.b32.xlu2 %v523_v22, %s1640_s21 }
 0x8da   :  { %v526_v24 = vpop.permute.xlu2 %525 }
 0x8db   :  { %v1889_v25 = vadd.f32 %v526_v24, %v518_v23 }
 0x8dd   :  { %1428 = vtanh.f32 %v1889_v25 }
 0x8e3   :  { %v1429_v26 = vpop.eup %1428 }
 0x8e4   :  { %531 = vrot.lane.b32.xlu1 %v1429_v26, %s1640_s21 }
 0x8e9   :  { %v591_v32 = vpop.permute.xlu0 %590 }
 0x8ea   :  { %v1894_v40 = vadd.f32 %v591_v32, %v583_v30 }
 0x8ec   :  { %1430 = vtanh.f32 %v1894_v40 }
 0x8f2   :  { %v1431_v31 = vpop.eup %1430 }
 0x8f3   :  { %596 = vrot.lane.b32.xlu2 %v1431_v31, %s1640_s21 }
 0x94d   :  { %v597_v44 = vpop.permute.xlu2 %596 }
 0x94e   :  { %v599_v41 = vmul.f32 %v597_v44, %v580_v13 }
 0x950   :  { %601 = vrot.lane.b32.xlu0 %v599_v41, %s1641_s2 }
 0x956   :  { %v532_v27 = vpop.permute.xlu1 %531 }
 0x957   :  { %v1899_v45 = vmul.f32 %v532_v27, %v515_v21 }
 0x959   :  { %604 = vrot.lane.b32.xlu1 %v1899_v45, %s1642_s26 }
 0x9c2   :  { %v602_v48 = vpop.permute.xlu0 %601 }
 0x9c3   :  { %1334 = vmatmul.msk.f32.vlgmr.msra.gmra.mxu0 %vm137_vm1, %v602_v48 }
 0x9cb   :  { %v605_v28 = vpop.permute.xlu1 %604 }
 0x9cc   :  { %v607_v29 = vsel %vm137_vm1, %v602_v48, %v605_v28 }
 0x9cd   :  { %1332 = vmatmul.msk.f32.vlgmr.msra.gmra.mxu2 %vm209_vm6, %v607_v29 }
 0x9ce   :  { %1151 = vmatpush.msra.mxu2 %v1746_v33 }
 0x9d0   :  { %1152 = vmatpush.msra.mxu2 %v1748_v34 }
 0x9d2   :  { %1153 = vmatpush.msra.mxu2 %v1752_v35 }
 0x9d4   :  { %1154 = vmatpush.msra.mxu2 %v1757_v36 }
 0x9d6   :  { %1155 = vmatpush.msra.mxu2 %v1762_v37 }
 0x9d8   :  { %1156 = vmatpush.msra.mxu2 %v1767_v38 }
 0x9da   :  { %1157 = vmatpush.msra.mxu2 %v1772_v39 }
 0x9dc   :  { %1158 = vmatpush.msra.mxu2 %v1782_v42 }
 0xa40   :  { %v693_v49 = vpop.f32.mrf.mxu0 }
 0xa41   :  { %v694_v50 = vadd.f32 %v1737_v10, %v693_v49 }
 0xa43   :  { %1432 = vtanh.f32 %v694_v50  ;;  %v1335_v3 = vmul.f32 -1.442695, %v694_v50 }
 0xa49   :  { %v1433_v51 = vpop.eup %1432 }
 0xa4a   :  { %718 = vrot.lane.b32.xlu0 %v1433_v51, %s1640_s21 }
 0xa50   :  { %v628_v52 = vpop.f32.mrf.mxu2 }
 0xa51   :  { %v629_v53 = vadd.f32 %v1817_v46, %v628_v52 }
 0xa53   :  { %1434 = vtanh.f32 %v629_v53  ;;  %v1333_v55 = vmul.f32 -1.442695, %v629_v53 }
 0xa55   :  { %1436 = vpow2.f32 %v1333_v55 }
 0xa56   :  { %1438 = vpow2.f32 %v1335_v3 }
 0xa59   :  { %v1435_v54 = vpop.eup %1434 }
 0xa5a   :  { %653 = vrot.lane.b32.xlu2 %v1435_v54, %s1640_s21 }
 0xa5b   :  { %v1437_v4 = vpop.eup %1436 }
 0xa5c   :  { %v634_v5 = vadd.f32 1.0, %v1437_v4  ;;  %v1439_v56 = vpop.eup %1438 }
 0xa5d   :  { %v699_v6 = vadd.f32 1.0, %v1439_v56 }
 0xa5e   :  { %1440 = vrcp.f32 %v634_v5  ;;  %v646_v1 = vand.u32 2147483648, %v634_v5  ;;  %vm640_vm3 = vweird.f32 %v634_v5  ;;  %v644_v2 = vand.u32 2147483647, %v634_v5 }
 0xa5f   :  { %1442 = vrcp.f32 %v699_v6  ;;  %v711_v15 = vand.u32 2147483648, %v699_v6  ;;  %vm705_vm8 = vweird.f32 %v699_v6  ;;  %v709_v16 = vand.u32 2147483647, %v699_v6 }
 0xa60   :  { %v647_v9 = vor.u32 1.1754944e-38, %v646_v1  ;;  %vm645_vm5 = vcmp.eq.f32.partialorder %v644_v2, 8.507059e+37 }
 0xa61   :  { %v712_v18 = vor.u32 1.1754944e-38, %v711_v15  ;;  %vm710_vm10 = vcmp.eq.f32.partialorder %v709_v16, 8.507059e+37 }
 0xa64   :  { %v1441_v57 = vpop.eup %1440 }
 0xa65   :  { %v636_v58 = vmul.f32 %v1441_v57, %v634_v5  ;;  %v1443_v60 = vpop.eup %1442  ;;  %vm641_vm2 = vweird.f32 %v1441_v57 }
 0xa66   :  { %v701_v62 = vmul.f32 %v1443_v60, %v699_v6  ;;  %vm642_vm4 = vmor %vm640_vm3, %vm641_vm2  ;;  %vm706_vm7 = vweird.f32 %v1443_v60 }
 0xa67   :  { %v637_v59 = vsub.f32 1.0, %v636_v58  ;;  %vm707_vm9 = vmor %vm705_vm8, %vm706_vm7 }
 0xa68   :  { %v702_v0 = vsub.f32 1.0, %v701_v62 }
 0xa69   :  { %v638_v61 = vmul.f32 %v1441_v57, %v637_v59 }
 0xa6a   :  { %v703_v8 = vmul.f32 %v1443_v60, %v702_v0 }
 0xa6b   :  { %v639_v63 = vadd.f32 %v1441_v57, %v638_v61 }
 0xa6c   :  { %v704_v14 = vadd.f32 %v1443_v60, %v703_v8 }
 0xa6d   :  { %v643_v7 = vsel %vm642_vm4, %v1441_v57, %v639_v63 }
 0xa6e   :  { %v648_v12 = vsel %vm645_vm5, %v647_v9, %v643_v7  ;;  %v708_v17 = vsel %vm707_vm9, %v1443_v60, %v704_v14 }
 0xa6f   :  { %v713_v20 = vsel %vm710_vm10, %v712_v18, %v708_v17  ;;  %v651_v30 = vmul.f32 %v648_v12, %v1889_v25 }
 0xa70   :  { %v716_v22 = vmul.f32 %v713_v20, %v1894_v40 }
 0xab4   :  { %v654_v11 = vpop.permute.xlu2 %653 }
 0xab5   :  { %v656_v13 = vmul.f32 %v654_v11, %v648_v12 }
 0xab7   :  { %658 = vrot.lane.b32.xlu1 %v656_v13, %s1640_s21 }
 0xabc   :  { %v719_v19 = vpop.permute.xlu0 %718 }
 0xabd   :  { %v721_v21 = vmul.f32 %v719_v19, %v713_v20 }
 0xabf   :  { %723 = vrot.lane.b32.xlu2 %v721_v21, %s1640_s21 }
 0xb19   :  { %v724_v23 = vpop.permute.xlu2 %723 }
 0xb1a   :  { %v1921_v24 = vadd.f32 %v724_v23, %v716_v22 }
 0xb1c   :  { %1444 = vtanh.f32 %v1921_v24 }
 0xb22   :  { %v1445_v26 = vpop.eup %1444 }
 0xb23   :  { %729 = vrot.lane.b32.xlu1 %v1445_v26, %s1640_s21 }
 0xb29   :  { %v659_v32 = vpop.permute.xlu1 %658 }
 0xb2a   :  { %v1926_v31 = vadd.f32 %v659_v32, %v651_v30 }
 0xb2c   :  { %1446 = vtanh.f32 %v1926_v31 }
 0xb32   :  { %v1447_v44 = vpop.eup %1446 }
 0xb33   :  { %664 = vrot.lane.b32.xlu0 %v1447_v44, %s1640_s21 }
 0xb95   :  { %v730_v41 = vpop.permute.xlu1 %729 }
 0xb96   :  { %v732_v40 = vmul.f32 %v730_v41, %v713_v20 }
 0xb98   :  { %734 = vrot.lane.b32.xlu2 %v732_v40, %s1641_s2  ;;  %v1974_v40 = vld [vmem:[%s2070_s4] ss:$0 sm:$0xff] }
 0xba5   :  { %v665_v27 = vpop.permute.xlu0 %664 }
 0xba6   :  { %v1931_v48 = vmul.f32 %v665_v27, %v648_v12 }
 0xba8   :  { %737 = vrot.lane.b32.xlu0 %v1931_v48, %s1642_s26 }
 0xbf2   :  { %v735_v28 = vpop.permute.xlu2 %734 }
 0xc1a   :  { %v738_v25 = vpop.permute.xlu0 %737 }
 0xc1b   :  { %v740_v29 = vsel %vm137_vm1, %v735_v28, %v738_v25 }
 0xc1c   :  { %1336 = vmatmul.msk.f32.vlgmr.msra.gmra.mxu3 %vm209_vm6, %v740_v29 }
 0xc1d   :  { %1018 = vmatpush.msra.mxu3 %v1746_v33 }
 0xc1f   :  { %1019 = vmatpush.msra.mxu3 %v1748_v34 }
 0xc21   :  { %1020 = vmatpush.msra.mxu3 %v1752_v35 }
 0xc23   :  { %1021 = vmatpush.msra.mxu3 %v1757_v36 }
 0xc24   :  { %1338 = vmatmul.msk.f32.vlgmr.msrb.gmra.mxu3 %vm137_vm1, %v735_v28 }
 0xc25   :  { %1022 = vmatpush.msra.mxu3 %v1762_v37 }
 0xc27   :  { %1023 = vmatpush.msra.mxu3 %v1767_v38 }
 0xc29   :  { %1024 = vmatpush.msra.mxu3 %v1772_v39 }
 0xc2b   :  { %1025 = vmatpush.msra.mxu3 %v1782_v42 }
 0xc9f   :  { %v761_v49 = vpop.f32.mrf.mxu3 }
 0xca0   :  { %v762_v50 = vadd.f32 %v1817_v46, %v761_v49 }
 0xca2   :  { %1448 = vtanh.f32 %v762_v50  ;;  %v1337_v37 = vmul.f32 -1.442695, %v762_v50 }
 0xca7   :  { %v826_v33 = vpop.f32.mrf.mxu3 }
 0xca8   :  { %v1449_v34 = vpop.eup %1448  ;;  %v827_v35 = vadd.f32 %v1737_v10, %v826_v33 }
 0xca9   :  { %786 = vrot.lane.b32.xlu2 %v1449_v34, %s1640_s21 }
 0xcaa   :  { %1450 = vtanh.f32 %v827_v35  ;;  %v1339_v53 = vmul.f32 -1.442695, %v827_v35 }
 0xcab   :  { %1452 = vpow2.f32 %v1337_v37 }
 0xcb0   :  { %v1451_v36 = vpop.eup %1450 }
 0xcb1   :  { %851 = vrot.lane.b32.xlu1 %v1451_v36, %s1640_s21  ;;  %v1453_v38 = vpop.eup %1452 }
 0xcb2   :  { %v767_v39 = vadd.f32 1.0, %v1453_v38 }
 0xcb4   :  { %1454 = vrcp.f32 %v767_v39  ;;  %v779_v10 = vand.u32 2147483648, %v767_v39  ;;  %vm773_vm12 = vweird.f32 %v767_v39  ;;  %v777_v3 = vand.u32 2147483647, %v767_v39 }
 0xcb5   :  { %1456 = vpow2.f32 %v1339_v53 }
 0xcb6   :  { %v780_v56 = vor.u32 1.1754944e-38, %v779_v10  ;;  %vm778_vm14 = vcmp.eq.f32.partialorder %v777_v3, 8.507059e+37 }
 0xcba   :  { %v1455_v42 = vpop.eup %1454 }
 0xcbb   :  { %v769_v51 = vmul.f32 %v1455_v42, %v767_v39  ;;  %vm774_vm11 = vweird.f32 %v1455_v42  ;;  %v1457_v4 = vpop.eup %1456 }
 0xcbc   :  { %vm775_vm13 = vmor %vm773_vm12, %vm774_vm11  ;;  %v832_v6 = vadd.f32 1.0, %v1457_v4 }
 0xcbd   :  { %v770_v52 = vsub.f32 1.0, %v769_v51 }
 0xcbe   :  { %1458 = vrcp.f32 %v832_v6  ;;  %v844_v1 = vand.u32 2147483648, %v832_v6  ;;  %vm838_vm0 = vweird.f32 %v832_v6  ;;  %v842_v2 = vand.u32 2147483647, %v832_v6 }
 0xcbf   :  { %v771_v54 = vmul.f32 %v1455_v42, %v770_v52 }
 0xcc0   :  { %v845_v8 = vor.u32 1.1754944e-38, %v844_v1  ;;  %vm843_vm3 = vcmp.eq.f32.partialorder %v842_v2, 8.507059e+37 }
 0xcc1   :  { %v772_v55 = vadd.f32 %v1455_v42, %v771_v54 }
 0xcc3   :  { %v776_v5 = vsel %vm775_vm13, %v1455_v42, %v772_v55 }
 0xcc4   :  { %v781_v58 = vsel %vm778_vm14, %v780_v56, %v776_v5  ;;  %v1459_v60 = vpop.eup %1458 }
 0xcc5   :  { %v834_v61 = vmul.f32 %v1459_v60, %v832_v6  ;;  %vm839_vm15 = vweird.f32 %v1459_v60  ;;  %v784_v13 = vmul.f32 %v781_v58, %v1926_v31 }
 0xcc6   :  { %vm840_vm2 = vmor %vm838_vm0, %vm839_vm15 }
 0xcc7   :  { %v835_v62 = vsub.f32 1.0, %v834_v61 }
 0xcc9   :  { %v836_v63 = vmul.f32 %v1459_v60, %v835_v62 }
 0xccb   :  { %v837_v0 = vadd.f32 %v1459_v60, %v836_v63 }
 0xccd   :  { %v841_v7 = vsel %vm840_vm2, %v1459_v60, %v837_v0 }
 0xcce   :  { %v846_v11 = vsel %vm843_vm3, %v845_v8, %v841_v7 }
 0xccf   :  { %v849_v17 = vmul.f32 %v846_v11, %v1921_v24 }
 0xd03   :  { %v787_v57 = vpop.permute.xlu2 %786 }
 0xd04   :  { %v789_v59 = vmul.f32 %v787_v57, %v781_v58 }
 0xd06   :  { %791 = vrot.lane.b32.xlu1 %v789_v59, %s1640_s21 }
 0xd23   :  { %v852_v9 = vpop.permute.xlu1 %851 }
 0xd24   :  { %v854_v12 = vmul.f32 %v852_v9, %v846_v11 }
 0xd26   :  { %856 = vrot.lane.b32.xlu0 %v854_v12, %s1640_s21 }
 0xd78   :  { %v792_v14 = vpop.permute.xlu1 %791 }
 0xd79   :  { %v1953_v15 = vadd.f32 %v792_v14, %v784_v13 }
 0xd7b   :  { %1460 = vtanh.f32 %v1953_v15 }
 0xd81   :  { %v1461_v16 = vpop.eup %1460 }
 0xd82   :  { %797 = vrot.lane.b32.xlu0 %v1461_v16, %s1640_s21 }
 0xd98   :  { %v857_v18 = vpop.permute.xlu0 %856 }
 0xd99   :  { %v1958_v19 = vadd.f32 %v857_v18, %v849_v17 }
 0xd9b   :  { %1462 = vtanh.f32 %v1958_v19 }
 0xda1   :  { %v1463_v20 = vpop.eup %1462 }
 0xda2   :  { %862 = vrot.lane.b32.xlu2 %v1463_v20, %s1640_s21 }
 0xdf4   :  { %v798_v21 = vpop.permute.xlu0 %797 }
 0xdf5   :  { %v1962_v22 = vmul.f32 %v798_v21, %v781_v58 }
 0xdf7   :  { %870 = vrot.lane.b32.xlu2 %v1962_v22, %s1642_s26 }
 0xdfc   :  { %v863_v23 = vpop.permute.xlu2 %862 }
 0xdfd   :  { %v865_v26 = vmul.f32 %v863_v23, %v846_v11 }
 0xdff   :  { %867 = vrot.lane.b32.xlu1 %v865_v26, %s1641_s2 }
 0xe51   :  { %v871_v30 = vpop.permute.xlu2 %870 }
 0xe71   :  { %v868_v24 = vpop.permute.xlu1 %867 }
 0xe72   :  { %v873_v32 = vsel %vm137_vm1, %v868_v24, %v871_v30  ;;  %1342 = vmatmul.msk.f32.vlgmr.msrb.gmra.mxu2 %vm137_vm1, %v868_v24 }
 0xe73   :  { %1340 = vmatmul.msk.f32.vlgmr.msrb.gmra.mxu0 %vm209_vm6, %v873_v32 }
 0xef0   :  { %v894_v31 = vpop.f32.mrf.mxu0 }
 0xef1   :  { %v895_v44 = vadd.f32 %v1817_v46, %v894_v31 }
 0xef3   :  { %1464 = vtanh.f32 %v895_v44  ;;  %v1341_v29 = vmul.f32 -1.442695, %v895_v44 }
 0xef5   :  { %v959_v41 = vpop.f32.mrf.mxu2 }
 0xef6   :  { %v960_v27 = vadd.f32 %v1974_v40, %v959_v41 }
 0xef8   :  { %1466 = vtanh.f32 %v960_v27  ;;  %v1343_v49 = vmul.f32 -1.442695, %v960_v27 }
 0xef9   :  { %v1465_v28 = vpop.eup %1464  ;;  %1468 = vpow2.f32 %v1341_v29 }
 0xefa   :  { %919 = vrot.lane.b32.xlu0 %v1465_v28, %s1640_s21  ;;  %1470 = vpow2.f32 %v1343_v49 }
 0xefe   :  { %v1467_v25 = vpop.eup %1466 }
 0xeff   :  { %984 = vrot.lane.b32.xlu1 %v1467_v25, %s1640_s21  ;;  %v1469_v50 = vpop.eup %1468 }
 0xf00   :  { %v900_v33 = vadd.f32 1.0, %v1469_v50  ;;  %v1471_v34 = vpop.eup %1470 }
 0xf01   :  { %v965_v35 = vadd.f32 1.0, %v1471_v34 }
 0xf02   :  { %1472 = vrcp.f32 %v900_v33  ;;  %v912_v54 = vand.u32 2147483648, %v900_v33  ;;  %vm906_vm5 = vweird.f32 %v900_v33  ;;  %v910_v10 = vand.u32 2147483647, %v900_v33 }
 0xf03   :  { %1474 = vrcp.f32 %v965_v35  ;;  %v977_v56 = vand.u32 2147483648, %v965_v35  ;;  %vm971_vm10 = vweird.f32 %v965_v35  ;;  %v975_v58 = vand.u32 2147483647, %v965_v35 }
 0xf04   :  { %v913_v4 = vor.u32 1.1754944e-38, %v912_v54  ;;  %vm911_vm9 = vcmp.eq.f32.partialorder %v910_v10, 8.507059e+37 }
 0xf05   :  { %v978_v61 = vor.u32 1.1754944e-38, %v977_v56  ;;  %vm976_vm12 = vcmp.eq.f32.partialorder %v975_v58, 8.507059e+37 }
 0xf08   :  { %v1473_v36 = vpop.eup %1472 }
 0xf09   :  { %v902_v37 = vmul.f32 %v1473_v36, %v900_v33  ;;  %v1475_v38 = vpop.eup %1474  ;;  %vm907_vm4 = vweird.f32 %v1473_v36 }
 0xf0a   :  { %v967_v42 = vmul.f32 %v1475_v38, %v965_v35  ;;  %vm908_vm7 = vmor %vm906_vm5, %vm907_vm4  ;;  %vm972_vm8 = vweird.f32 %v1475_v38 }
 0xf0b   :  { %v903_v39 = vsub.f32 1.0, %v902_v37  ;;  %vm973_vm11 = vmor %vm971_vm10, %vm972_vm8 }
 0xf0c   :  { %v968_v52 = vsub.f32 1.0, %v967_v42 }
 0xf0d   :  { %v904_v51 = vmul.f32 %v1473_v36, %v903_v39 }
 0xf0e   :  { %v969_v55 = vmul.f32 %v1475_v38, %v968_v52 }
 0xf0f   :  { %v905_v53 = vadd.f32 %v1473_v36, %v904_v51 }
 0xf10   :  { %v970_v5 = vadd.f32 %v1475_v38, %v969_v55 }
 0xf11   :  { %v909_v3 = vsel %vm908_vm7, %v1473_v36, %v905_v53 }
 0xf12   :  { %v914_v57 = vsel %vm911_vm9, %v913_v4, %v909_v3  ;;  %v974_v60 = vsel %vm973_vm11, %v1475_v38, %v970_v5 }
 0xf13   :  { %v979_v63 = vsel %vm976_vm12, %v978_v61, %v974_v60  ;;  %v917_v1 = vmul.f32 %v914_v57, %v1953_v15 }
 0xf14   :  { %v982_v9 = vmul.f32 %v979_v63, %v1958_v19 }
 0xf6c   :  { %v920_v6 = vpop.permute.xlu0 %919 }
 0xf6d   :  { %v922_v59 = vmul.f32 %v920_v6, %v914_v57 }
 0xf6f   :  { %924 = vrot.lane.b32.xlu2 %v922_v59, %s1640_s21 }
 0xf71   :  { %v985_v62 = vpop.permute.xlu1 %984 }
 0xf72   :  { %v987_v0 = vmul.f32 %v985_v62, %v979_v63 }
 0xf74   :  { %989 = vrot.lane.b32.xlu0 %v987_v0, %s1640_s21 }
 0xfc9   :  { %v925_v2 = vpop.permute.xlu2 %924 }
 0xfca   :  { %v1982_v7 = vadd.f32 %v925_v2, %v917_v1 }
 0xfcc   :  { %1476 = vtanh.f32 %v1982_v7 }
 0xfd2   :  { %v1477_v8 = vpop.eup %1476 }
 0xfd3   :  { %930 = vrot.lane.b32.xlu1 %v1477_v8, %s1640_s21 }
 0xfe6   :  { %v990_v11 = vpop.permute.xlu0 %989 }
 0xfe7   :  { %v1987_v12 = vadd.f32 %v990_v11, %v982_v9 }
 0xfe9   :  { %1478 = vtanh.f32 %v1987_v12 }
 0xfef   :  { %v1479_v13 = vpop.eup %1478 }
 0xff0   :  { %995 = vrot.lane.b32.xlu2 %v1479_v13, %s1640_s21 }
0x1045   :  { %v931_v14 = vpop.permute.xlu1 %930 }
0x1046   :  { %v1991_v15 = vmul.f32 %v931_v14, %v914_v57  ;;  %v1505_v14 = vld [vmem:[%s2070_s4 + $0x1] ss:$0 sm:$0xff] }
0x1048   :  { %1003 = vrot.lane.b32.xlu1 %v1991_v15, %s1642_s26 }
0x104a   :  { %v996_v16 = vpop.permute.xlu2 %995 }
0x104b   :  { %v998_v17 = vmul.f32 %v996_v16, %v979_v63 }
0x104d   :  { %1000 = vrot.lane.b32.xlu0 %v998_v17, %s1641_s2 }
0x10ba   :  { %v1004_v18 = vpop.permute.xlu1 %1003 }
0x10bf   :  { %v1001_v19 = vpop.permute.xlu0 %1000 }
0x10c0   :  { %v1006_v20 = vsel %vm137_vm1, %v1001_v19, %v1004_v18  ;;  %1346 = vmatmul.msk.f32.vlgmr.msra.gmra.mxu1 %vm137_vm1, %v1001_v19 }
0x10c1   :  { %1344 = vmatmul.msk.f32.vlgmr.msra.gmra.mxu3 %vm209_vm6, %v1006_v20 }
0x113d   :  { %v1092_v21 = vpop.f32.mrf.mxu1 }
0x113e   :  { %v1093_v23 = vadd.f32 %v1974_v40, %v1092_v21  ;;  %v1217_v21 = vld [vmem:[#allocation9 + $0x18] sm:$0xff] }
0x113f   :  { %1358 = vmatpush.msrb.mxu1 %v1217_v21  ;;  %1258 = vmatpush.msra.mxu0 %v1217_v21 }
0x1140   :  { %1480 = vtanh.f32 %v1093_v23  ;;  %v1347_v27 = vmul.f32 -1.442695, %v1093_v23 }
0x1144   :  { %v1027_v26 = vpop.f32.mrf.mxu3 }
0x1145   :  { %v1028_v30 = vadd.f32 %v1817_v46, %v1027_v26  ;;  %v1216_v26 = vld [vmem:[#allocation9 + $0x10] sm:$0xff] }
0x1146   :  { %v1481_v24 = vpop.eup %1480  ;;  %1359 = vmatpush.msrb.mxu1 %v1216_v26  ;;  %1259 = vmatpush.msra.mxu0 %v1216_v26 }
0x1147   :  { %1482 = vtanh.f32 %v1028_v30  ;;  %1117 = vrot.lane.b32.xlu0 %v1481_v24, %s1640_s21  ;;  %v1345_v31 = vmul.f32 -1.442695, %v1028_v30  ;;  %v1215_v30 = vld [vmem:[#allocation9 + $0x8] sm:$0xff]  ;;  %v1214_v24 = vld [vmem:[#allocation9] sm:$0xff] }
0x1148   :  { %1360 = vmatpush.msrb.mxu1 %v1215_v30  ;;  %1260 = vmatpush.msra.mxu0 %v1215_v30 }
0x1149   :  { %1484 = vpow2.f32 %v1345_v31 }
0x114a   :  { %1361 = vmatpush.msrb.mxu1 %v1214_v24  ;;  %1261 = vmatpush.msra.mxu0 %v1214_v24 }
0x114d   :  { %v1483_v32 = vpop.eup %1482 }
0x114e   :  { %1052 = vrot.lane.b32.xlu2 %v1483_v32, %s1640_s21 }
0x114f   :  { %v1485_v44 = vpop.eup %1484 }
0x1150   :  { %v1033_v41 = vadd.f32 1.0, %v1485_v44 }
0x1152   :  { %1486 = vrcp.f32 %v1033_v41  ;;  %v1045_v33 = vand.u32 2147483648, %v1033_v41  ;;  %vm1039_vm14 = vweird.f32 %v1033_v41  ;;  %v1043_v35 = vand.u32 2147483647, %v1033_v41 }
0x1153   :  { %1488 = vpow2.f32 %v1347_v27 }
0x1154   :  { %v1046_v37 = vor.u32 1.1754944e-38, %v1045_v33  ;;  %vm1044_vm0 = vcmp.eq.f32.partialorder %v1043_v35, 8.507059e+37 }
0x1158   :  { %v1487_v28 = vpop.eup %1486 }
0x1159   :  { %v1035_v40 = vmul.f32 %v1487_v28, %v1033_v41  ;;  %v1489_v25 = vpop.eup %1488  ;;  %vm1040_vm13 = vweird.f32 %v1487_v28 }
0x115a   :  { %v1098_v29 = vadd.f32 1.0, %v1489_v25  ;;  %vm1041_vm15 = vmor %vm1039_vm14, %vm1040_vm13 }
0x115b   :  { %v1036_v49 = vsub.f32 1.0, %v1035_v40 }
0x115c   :  { %1490 = vrcp.f32 %v1098_v29  ;;  %v1110_v55 = vand.u32 2147483648, %v1098_v29  ;;  %vm1104_vm3 = vweird.f32 %v1098_v29  ;;  %v1108_v10 = vand.u32 2147483647, %v1098_v29 }
0x115d   :  { %v1037_v46 = vmul.f32 %v1487_v28, %v1036_v49 }
0x115e   :  { %v1111_v4 = vor.u32 1.1754944e-38, %v1110_v55  ;;  %vm1109_vm5 = vcmp.eq.f32.partialorder %v1108_v10, 8.507059e+37 }
0x115f   :  { %v1038_v50 = vadd.f32 %v1487_v28, %v1037_v46 }
0x1161   :  { %v1042_v36 = vsel %vm1041_vm15, %v1487_v28, %v1038_v50 }
0x1162   :  { %v1491_v34 = vpop.eup %1490  ;;  %v1047_v42 = vsel %vm1044_vm0, %v1046_v37, %v1042_v36 }
0x1163   :  { %v1100_v38 = vmul.f32 %v1491_v34, %v1098_v29  ;;  %vm1105_vm2 = vweird.f32 %v1491_v34  ;;  %v1050_v60 = vmul.f32 %v1047_v42, %v1982_v7 }
0x1164   :  { %vm1106_vm4 = vmor %vm1104_vm3, %vm1105_vm2 }
0x1165   :  { %v1101_v52 = vsub.f32 1.0, %v1100_v38 }
0x1167   :  { %v1102_v53 = vmul.f32 %v1491_v34, %v1101_v52 }
0x1169   :  { %v1103_v54 = vadd.f32 %v1491_v34, %v1102_v53 }
0x116b   :  { %v1107_v3 = vsel %vm1106_vm4, %v1491_v34, %v1103_v54 }
0x116c   :  { %v1112_v56 = vsel %vm1109_vm5, %v1111_v4, %v1107_v3 }
0x116d   :  { %v1115_v57 = vmul.f32 %v1112_v56, %v1987_v12 }
0x11a8   :  { %v1053_v39 = vpop.permute.xlu2 %1052 }
0x11a9   :  { %v1055_v51 = vmul.f32 %v1053_v39, %v1047_v42  ;;  %v1375_v39 = vld [vmem:[%s2072_s6] ss:$0 sm:$0xff]  ;;  %s1643_s6 = smov [#allocation11]  }
0x11aa   :  { %s1299_s11 = sshll.u32 %s1643_s6, 4  ;;  %s1300_s11 = int_to_ptr.vmem [resolvable:$true] %s1299_s11 }
0x11ab   :  { %1057 = vrot.lane.b32.xlu1 %v1055_v51, %s1640_s21 }
0x11b9   :  { %v1118_v5 = vpop.permute.xlu0 %1117 }
0x11ba   :  { %v1120_v6 = vmul.f32 %v1118_v5, %v1112_v56 }
0x11bc   :  { %1122 = vrot.lane.b32.xlu2 %v1120_v6, %s1640_s21 }
0x1216   :  { %v1123_v58 = vpop.permute.xlu2 %1122 }
0x1217   :  { %v1125_v59 = vadd.f32 %v1123_v58, %v1115_v57 }
0x1219   :  { %1492 = vtanh.f32 %v1125_v59 }
0x121d   :  { %v1058_v61 = vpop.permute.xlu1 %1057 }
0x121e   :  { %v2007_v62 = vadd.f32 %v1058_v61, %v1050_v60 }
0x121f   :  { %v1493_v63 = vpop.eup %1492 }
0x1220   :  { %1494 = vtanh.f32 %v2007_v62  ;;  %1128 = vrot.lane.b32.xlu1 %v1493_v63, %s1640_s21 }
0x1226   :  { %v1495_v0 = vpop.eup %1494 }
0x1227   :  { %1063 = vrot.lane.b32.xlu0 %v1495_v0, %s1640_s21 }
0x1292   :  { %v1129_v1 = vpop.permute.xlu1 %1128 }
0x1293   :  { %v1131_v2 = vmul.f32 %v1129_v1, %v1112_v56 }
0x1295   :  { %1133 = vrot.lane.b32.xlu2 %v1131_v2, %s1641_s2 }
0x1299   :  { %v1064_v8 = vpop.permute.xlu0 %1063 }
0x129a   :  { %v2013_v9 = vmul.f32 %v1064_v8, %v1047_v42 }
0x129c   :  { %1136 = vrot.lane.b32.xlu0 %v2013_v9, %s1642_s26 }
0x12ef   :  { %v1134_v7 = vpop.permute.xlu2 %1133 }
0x130e   :  { %v1137_v11 = vpop.permute.xlu0 %1136 }
0x130f   :  { %v1139_v12 = vsel %vm137_vm1, %v1134_v7, %v1137_v11 }
0x1310   :  { %1348 = vmatmul.msk.f32.vlgmr.msra.gmra.mxu2 %vm209_vm6, %v1139_v12 }
0x1393   :  { %v1160_v13 = vpop.f32.mrf.mxu2 }
0x1394   :  { %v1161_v16 = vadd.f32 %v1505_v14, %v1160_v13 }
0x1396   :  { %1496 = vtanh.f32 %v1161_v16  ;;  %v1349_v18 = vmul.f32 -1.442695, %v1161_v16 }
0x1398   :  { %1498 = vpow2.f32 %v1349_v18 }
0x139c   :  { %v1497_v17 = vpop.eup %1496 }
0x139d   :  { %1185 = vrot.lane.b32.xlu1 %v1497_v17, %s1640_s21 }
0x139e   :  { %v1499_v19 = vpop.eup %1498 }
0x139f   :  { %v1166_v20 = vadd.f32 1.0, %v1499_v19 }
0x13a1   :  { %1500 = vrcp.f32 %v1166_v20  ;;  %v1178_v31 = vand.u32 2147483648, %v1166_v20  ;;  %vm1172_vm7 = vweird.f32 %v1166_v20  ;;  %v1176_v44 = vand.u32 2147483647, %v1166_v20 }
0x13a3   :  { %v1179_v27 = vor.u32 1.1754944e-38, %v1178_v31  ;;  %vm1177_vm9 = vcmp.eq.f32.partialorder %v1176_v44, 8.507059e+37 }
0x13a5   :  { %669 = vrot.lane.b32.xlu1 %v1931_v48, %s1641_s2 }
0x13a7   :  { %v1501_v23 = vpop.eup %1500 }
0x13a8   :  { %v1168_v48 = vmul.f32 %v1501_v23, %v1166_v20  ;;  %vm1173_vm6 = vweird.f32 %v1501_v23 }
0x13a9   :  { %vm1174_vm8 = vmor %vm1172_vm7, %vm1173_vm6 }
0x13ad   :  { %935 = vrot.lane.b32.xlu1 %v1991_v15, %s1641_s2 }
0x13b5   :  { %536 = vrot.lane.b32.xlu1 %v1899_v45, %s1641_s2  ;;  %v1169_v45 = vsub.f32 1.0, %v1168_v48 }
0x13b7   :  { %v1170_v15 = vmul.f32 %v1501_v23, %v1169_v45 }
0x13b9   :  { %v1171_v32 = vadd.f32 %v1501_v23, %v1170_v15 }
0x13bb   :  { %v1175_v41 = vsel %vm1174_vm8, %v1501_v23, %v1171_v32 }
0x13bc   :  { %v1180_v40 = vsel %vm1177_vm9, %v1179_v27, %v1175_v41 }
0x13bd   :  { %v1183_v33 = vmul.f32 %v1180_v40, %v2007_v62 }
0x140f   :  { %v1186_v28 = vpop.permute.xlu1 %1185 }
0x1410   :  { %v1188_v25 = vmul.f32 %v1186_v28, %v1180_v40 }
0x1412   :  { %1190 = vrot.lane.b32.xlu2 %v1188_v25, %s1640_s21 }
0x1417   :  { %v670_v29 = vpop.permute.xlu1 %669 }
0x1418   :  { %673 = vst.msk [vmem:[#allocation2 + $0x18] sm:$0xff] %vm137_vm1, %v670_v29 }
0x141a   :  { %802 = vrot.lane.b32.xlu2 %v1962_v22, %s1641_s2 }
0x141f   :  { %v936_v49 = vpop.permute.xlu1 %935  ;;  %v1209_v46 = vld [vmem:[#allocation2 + $0x18] sm:$0xff] }
0x1420   :  { %939 = vst.msk [vmem:[#allocation2 + $0x28] sm:$0xff] %vm137_vm1, %v936_v49  ;;  %1353 = vmatmul.msk.f32.vlgmr.msrb.gmra.mxu1 %vm137_vm1, %v1209_v46 }
0x1422   :  { %403 = vrot.lane.b32.xlu2 %v1871_v47, %s1641_s2 }
0x1427   :  { %v537_v50 = vpop.permute.xlu1 %536  ;;  %v1211_v47 = vld [vmem:[#allocation2 + $0x28] sm:$0xff] }
0x1428   :  { %540 = vst.msk [vmem:[#allocation2 + $0x10] sm:$0xff] %vm137_vm1, %v537_v50 }
0x142f   :  { %v1208_v57 = vld [vmem:[#allocation2 + $0x10] sm:$0xff] }
0x146c   :  { %v1191_v34 = vpop.permute.xlu2 %1190 }
0x146d   :  { %v1193_v35 = vadd.f32 %v1191_v34, %v1183_v33 }
0x146f   :  { %1502 = vtanh.f32 %v1193_v35 }
0x1474   :  { %v803_v36 = vpop.permute.xlu2 %802 }
0x1475   :  { %v1503_v37 = vpop.eup %1502  ;;  %806 = vst.msk [vmem:[#allocation2 + $0x20] sm:$0xff] %vm137_vm1, %v803_v36 }
0x1476   :  { %1196 = vrot.lane.b32.xlu0 %v1503_v37, %s1640_s21 }
0x147c   :  { %v404_v22 = vpop.permute.xlu2 %403  ;;  %v1210_v38 = vld [vmem:[#allocation2 + $0x20] sm:$0xff] }
0x147d   :  { %407 = vst.msk [vmem:[#allocation2 + $0x8] sm:$0xff] %vm137_vm1, %v404_v22  ;;  %1354 = vmatmul.msk.f32.gmra.mxu1 %vm137_vm1, %v1210_v38 }
0x147e   :  { %271 = vrot.lane.b32.xlu0 %v1834_v43, %s1641_s2 }
0x1484   :  { %v1207_v4 = vld [vmem:[#allocation2 + $0x8] sm:$0xff] }
0x1485   :  { %1355 = vmatmul.msk.f32.gmra.mxu1 %vm137_vm1, %v1211_v47 }
0x1486   :  { %1068 = vrot.lane.b32.xlu0 %v2013_v9, %s1641_s2 }
0x149d   :  { %v1272_v42 = vpop.f32.mrf.mxu1 }
0x149e   :  { %v1273_v51 = vadd.f32 %v1375_v39, %v1272_v42 }
0x14a0   :  { %1290 = vst [vmem:[#allocation11 + $0x18] sm:$0xff] %v1273_v51 }
0x14e8   :  { %v1197_v52 = vpop.permute.xlu0 %1196 }
0x14e9   :  { %v1199_v53 = vmul.f32 %v1197_v52, %v1180_v40 }
0x14eb   :  { %1201 = vrot.lane.b32.xlu2 %v1199_v53, %s1641_s2 }
0x14f0   :  { %v272_v54 = vpop.permute.xlu0 %271 }
0x14f1   :  { %274 = vst.msk [vmem:[#allocation2] sm:$0xff] %vm137_vm1, %v272_v54 }
0x14f8   :  { %v1069_v43 = vpop.permute.xlu0 %1068  ;;  %v1206_v55 = vld [vmem:[#allocation2] sm:$0xff] }
0x14f9   :  { %1072 = vst.msk [vmem:[#allocation2 + $0x30] sm:$0xff] %vm137_vm1, %v1069_v43  ;;  %1350 = vmatmul.msk.f32.vlgmr.msra.gmra.mxu0 %vm137_vm1, %v1206_v55 }
0x14fa   :  { %v1275_v10 = vpop.f32.mrf.mxu1 }
0x14fb   :  { %v1276_v3 = vadd.f32 %v1375_v39, %v1275_v10 }
0x14fd   :  { %1291 = vst [vmem:[#allocation11 + $0x20] sm:$0xff] %v1276_v3 }
0x1500   :  { %v1212_v5 = vld [vmem:[#allocation2 + $0x30] sm:$0xff] }
0x1501   :  { %1351 = vmatmul.msk.f32.gmra.mxu0 %vm137_vm1, %v1207_v4  ;;  %1356 = vmatmul.msk.f32.gmra.mxu1 %vm137_vm1, %v1212_v5 }
0x1502   :  { %v1278_v56 = vpop.f32.mrf.mxu1 }
0x1503   :  { %v1279_v6 = vadd.f32 %v1375_v39, %v1278_v56 }
0x1505   :  { %1292 = vst [vmem:[#allocation11 + $0x28] sm:$0xff] %v1279_v6 }
0x1509   :  { %1352 = vmatmul.msk.f32.gmra.mxu0 %vm137_vm1, %v1208_v57 }
0x1545   :  { %v1202_v58 = vpop.permute.xlu2 %1201 }
0x1546   :  { %1205 = vst.msk [vmem:[#allocation2 + $0x38] sm:$0xff] %vm137_vm1, %v1202_v58 }
0x154d   :  { %v1213_v59 = vld [vmem:[#allocation2 + $0x38] sm:$0xff] }
0x154e   :  { %1357 = vmatmul.msk.f32.gmra.mxu1 %vm137_vm1, %v1213_v59 }
0x1576   :  { %v1263_v60 = vpop.f32.mrf.mxu0 }
0x1577   :  { %v1264_v61 = vadd.f32 %v1375_v39, %v1263_v60 }
0x1579   :  { %1287 = vst [vmem:[#allocation11] sm:$0xff] %v1264_v61 }
0x157e   :  { %v1266_v62 = vpop.f32.mrf.mxu0  ;;  %v1281_v63 = vpop.f32.mrf.mxu1 }
0x157f   :  { %v1267_v0 = vadd.f32 %v1375_v39, %v1266_v62  ;;  %v1282_v1 = vadd.f32 %v1375_v39, %v1281_v63 }
0x1581   :  { %1288 = vst [vmem:[#allocation11 + $0x8] sm:$0xff] %v1267_v0 }
0x1582   :  { %1293 = vst [vmem:[#allocation11 + $0x30] sm:$0xff] %v1282_v1 }
0x1586   :  { %v1269_v2 = vpop.f32.mrf.mxu0 }
0x1587   :  { %v1270_v8 = vadd.f32 %v1375_v39, %v1269_v2 }
0x1589   :  { %1289 = vst [vmem:[#allocation11 + $0x10] sm:$0xff] %v1270_v8 }
0x15cb   :  { %v1284_v9 = vpop.f32.mrf.mxu1 }
0x15cc   :  { %v1285_v7 = vadd.f32 %v1375_v39, %v1284_v9 }
0x15ce   :  { %1294 = vst [vmem:[#allocation11 + $0x38] sm:$0xff] %v1285_v7 }
0x15cf   :  { %1307 = dma.vmem_to_hbm [thread:$0]  %s1300_s11, 1024, %s1302_s1, [#allocation5], %s1635_s9, %s1635_s9, %s1636_s10  }
0x15d0   :  { %1632 = dma.done.wait [#allocation5], 1024  }
0x15d1   :  { %1633 = vsyncadd [#allocation5], 4294966272 }
0x15d2   :  { %1312 = vsyncpa [#allocation4], 1 }
0x15d3   :  { %1313 = vsyncpa [#allocation7], 1 }
0x15d4   :  { %1314 = vsyncpa [#allocation10], 1 }
0x15d5   :  { %1315 = vsyncpa [#allocation5], 1 }

</bundles_post_ra>
